<compile_context>
chip_gen: v7x
topology: tpu7x:2x2x1
jax: 0.10.0
libtpu: 0.0.40
codegen_flags: <defaults>
</compile_context>

<pallas_src>
import jax
import jax.numpy as jnp
from jax.experimental import pallas as pl
from jax.experimental.pallas import tpu as pltpu

_SQRT_2_OVER_PI = 0.7978845608028654


def _gelu_tanh(x):
    # gelu_pytorch_tanh: 0.5*x*(1+tanh(sqrt(2/pi)*(x + 0.044715*x^3)))
    return 0.5 * x * (1.0 + jnp.tanh(_SQRT_2_OVER_PI * (x + 0.044715 * x * x * x)))


def _round_up(a, b):
    return (a + b - 1) // b * b


def _mlp_kernel(x_ref, wfc_ref, bfc_ref, wproj_ref, bproj_ref, o_ref, acc_ref):
    # x_ref:     (tm, H)   token tile (invariant along k)
    # wfc_ref:   (H, tk)   column slice of c_fc weight
    # bfc_ref:   (1, tk)   matching slice of c_fc bias
    # wproj_ref: (tk, H)   row slice of c_proj weight
    # bproj_ref: (1, H)    c_proj bias (added once, at the last k)
    # o_ref:     (tm, H)   output tile (invariant along k)
    # acc_ref:   (tm, H)   f32 accumulator scratch
    k = pl.program_id(1)

    @pl.when(k == 0)
    def _():
        acc_ref[...] = jnp.zeros_like(acc_ref)

    # First matmul on the MXU with f32 accumulation; GELU in f32 (exact per
    # k-slice since each slice of h only depends on its own W_fc columns).
    h = jnp.dot(x_ref[...], wfc_ref[...], preferred_element_type=jnp.float32)
    h = h + bfc_ref[...].astype(jnp.float32)
    h = _gelu_tanh(h)

    # Partial second matmul, accumulated in f32.
    acc_ref[...] += jnp.dot(h.astype(wproj_ref.dtype), wproj_ref[...],
                            preferred_element_type=jnp.float32)

    @pl.when(k == pl.num_programs(1) - 1)
    def _():
        o_ref[...] = (acc_ref[...]
                      + bproj_ref[...].astype(jnp.float32)).astype(o_ref.dtype)


def starcoder2_mlp(x, w_fc, b_fc, w_proj, b_proj, *, tm=128, tk=None,
                   vmem_limit_bytes=64 << 20):
    """x: [T, H]; w_fc: [H, I]; b_fc: [I]; w_proj: [I, H]; b_proj: [H]."""
    T, H = x.shape
    Hw, I = w_fc.shape
    assert Hw == H and w_proj.shape == (I, H)
    assert b_fc.shape == (I,) and b_proj.shape == (H,)

    # Intermediate-dim tile: largest 128-multiple <= 1024 that divides I
    # (fits double-buffered bf16 weight chunks on v5e/v6e/v7x at real sizes).
    if tk is None:
        tk = min(I, 1024)
        while I % tk != 0:
            tk -= 128
    assert I % tk == 0 and tk % 128 == 0, "intermediate size must tile by 128"

    # Ragged token counts: pad at the wrapper so in-kernel stores stay
    # full-tile / lane-dense.
    tm_eff = min(tm, _round_up(T, 8))
    Tp = _round_up(T, tm_eff)
    x_in = x if Tp == T else jnp.pad(x, ((0, Tp - T), (0, 0)))

    b_fc2 = b_fc.reshape(1, I)
    b_proj2 = b_proj.reshape(1, H)

    grid = (Tp // tm_eff, I // tk)

    grid_spec = pltpu.PrefetchScalarGridSpec(
        num_scalar_prefetch=0,
        grid=grid,
        in_specs=[
            pl.BlockSpec((tm_eff, H), lambda i, k: (i, 0)),   # x tile
            pl.BlockSpec((H, tk), lambda i, k: (0, k)),       # W_fc column slice
            pl.BlockSpec((1, tk), lambda i, k: (0, k)),       # b_fc slice
            pl.BlockSpec((tk, H), lambda i, k: (k, 0)),       # W_proj row slice
            pl.BlockSpec((1, H), lambda i, k: (0, 0)),        # b_proj
        ],
        out_specs=pl.BlockSpec((tm_eff, H), lambda i, k: (i, 0)),
        scratch_shapes=[pltpu.VMEM((tm_eff, H), jnp.float32)],
    )

    bytes_per = {jnp.dtype(a.dtype).itemsize for a in (x, w_fc, w_proj)}
    wt_bytes = jnp.dtype(w_fc.dtype).itemsize
    act_bytes = jnp.dtype(x.dtype).itemsize
    cost = pl.CostEstimate(
        flops=4 * Tp * H * I,
        transcendentals=Tp * I,
        bytes_accessed=(2 * H * I * wt_bytes            # both weight matrices
                        + 2 * Tp * H * act_bytes        # x in + y out
                        + (I + H) * act_bytes),         # biases
    )
    del bytes_per  # (only itemsizes used above)

    out = pl.pallas_call(
        _mlp_kernel,
        out_shape=jax.ShapeDtypeStruct((Tp, H), x.dtype),
        grid_spec=grid_spec,
        compiler_params=pltpu.CompilerParams(
            dimension_semantics=("parallel", "arbitrary"),
            vmem_limit_bytes=vmem_limit_bytes,
        ),
        cost_estimate=cost,
    )(x_in, w_fc, b_fc2, w_proj, b_proj2)

    return out if Tp == T else out[:T]


def starcoder2_mlp_ref(x, w_fc, b_fc, w_proj, b_proj):
    xf = x.astype(jnp.float32)
    h = xf @ w_fc.astype(jnp.float32) + b_fc.astype(jnp.float32)
    h = _gelu_tanh(h)
    return h @ w_proj.astype(jnp.float32) + b_proj.astype(jnp.float32)


if __name__ == "__main__":
    # Small Starcoder2-like config: hidden=256, intermediate=512, tokens=200
    # (deliberately not a multiple of the token tile to exercise padding).
    T, H, I = 200, 256, 512
    key = jax.random.PRNGKey(0)
    k1, k2, k3, k4, k5 = jax.random.split(key, 5)

    x = jax.random.normal(k1, (T, H), dtype=jnp.float32)
    w_fc = jax.random.normal(k2, (H, I), dtype=jnp.float32) * (1.0 / H ** 0.5)
    b_fc = jax.random.normal(k3, (I,), dtype=jnp.float32) * 0.01
    w_proj = jax.random.normal(k4, (I, H), dtype=jnp.float32) * (1.0 / I ** 0.5)
    b_proj = jax.random.normal(k5, (H,), dtype=jnp.float32) * 0.01

    ref = starcoder2_mlp_ref(x, w_fc, b_fc, w_proj, b_proj)

    # f32 path: strict check.
    out = starcoder2_mlp(x, w_fc, b_fc, w_proj, b_proj)
    out = jax.block_until_ready(out)
    assert out.shape == (T, H) and out.dtype == x.dtype
    assert jnp.allclose(out, ref, atol=1e-4, rtol=1e-4), "f32 mismatch vs reference"

    # bf16 path (MXU-native): loose check (expected bf16-level differences).
    out_bf16 = starcoder2_mlp(
        x.astype(jnp.bfloat16), w_fc.astype(jnp.bfloat16), b_fc.astype(jnp.bfloat16),
        w_proj.astype(jnp.bfloat16), b_proj.astype(jnp.bfloat16))
    out_bf16 = jax.block_until_ready(out_bf16)
    assert out_bf16.shape == (T, H) and out_bf16.dtype == jnp.bfloat16
    max_err = jnp.max(jnp.abs(out_bf16.astype(jnp.float32) - ref))
    assert bool(jnp.isfinite(max_err)) and float(max_err) < 0.25, "bf16 mismatch too large"

    print("KERNEL_OK")
</pallas_src>

<mosaic_0001>
module attributes {stable_mosaic.version = 11 : i64} {
  func.func @_mlp_kernel(%arg0: i32, %arg1: i32, %arg2: memref<128x256xf32, #tpu.memory_space<vmem>>, %arg3: memref<256x512xf32, #tpu.memory_space<vmem>>, %arg4: memref<1x512xf32, #tpu.memory_space<vmem>>, %arg5: memref<512x256xf32, #tpu.memory_space<vmem>>, %arg6: memref<1x256xf32, #tpu.memory_space<vmem>>, %arg7: memref<128x256xf32, #tpu.memory_space<vmem>>, %arg8: memref<128x256xf32, #tpu.memory_space<vmem>>) attributes {dimension_semantics = [#tpu.dimension_semantics<parallel>, #tpu.dimension_semantics<arbitrary>], iteration_bounds = array<i64: 2, 1>, scalar_prefetch = 0 : i64, scratch_operands = 1 : i64, tpu.core_type = #tpu.core_type<tc>, window_params = [{transform_indices = @transform_0, window_bounds = array<i64: 128, 256>}, {transform_indices = @transform_1, window_bounds = array<i64: 256, 512>}, {transform_indices = @transform_2, window_bounds = array<i64: 1, 512>}, {transform_indices = @transform_3, window_bounds = array<i64: 512, 256>}, {pipeline_mode = #tpu.pipeline_mode<synchronous>, transform_indices = @transform_4, window_bounds = array<i64: 1, 256>}, {transform_indices = @transform_5, window_bounds = array<i64: 128, 256>}]} {
    %c0_i32 = arith.constant 0 : i32
    %0 = arith.cmpi eq, %arg1, %c0_i32 : i32
    %1 = arith.extui %0 : i1 to i32
    %c0_i32_0 = arith.constant 0 : i32
    %2 = arith.cmpi ne, %1, %c0_i32_0 : i32
    scf.if %2 {
      %cst_19 = arith.constant 0.000000e+00 : f32
      %30 = vector.broadcast %cst_19 : f32 to vector<128x256xf32>
      %c0_20 = arith.constant 0 : index
      %c0_21 = arith.constant 0 : index
      %31 = vector.load %arg8[%c0_20, %c0_21] : memref<128x256xf32, #tpu.memory_space<vmem>>, vector<128x256xf32>
      tpu.vector_store %arg8[%c0_20, %c0_21], %30 {strides = array<i32>} : memref<128x256xf32, #tpu.memory_space<vmem>>, vector<128x256xf32>,
    } else {
    }
    %c0 = arith.constant 0 : index
    %c0_1 = arith.constant 0 : index
    %3 = vector.load %arg2[%c0, %c0_1] : memref<128x256xf32, #tpu.memory_space<vmem>>, vector<128x256xf32>
    %c0_2 = arith.constant 0 : index
    %c0_3 = arith.constant 0 : index
    %4 = vector.load %arg3[%c0_2, %c0_3] : memref<256x512xf32, #tpu.memory_space<vmem>>, vector<256x512xf32>
    %cst = arith.constant dense<0.000000e+00> : vector<128x512xf32>
    %5 = tpu.matmul %3, %4, %cst {dimension_numbers = #tpu.dot_dimension_numbers<[1], [0], [0], [1], [0, 0, 1, 1], [], []>} : vector<128x256xf32>, vector<256x512xf32>, vector<128x512xf32> -> vector<128x512xf32>
    %c0_4 = arith.constant 0 : index
    %c0_5 = arith.constant 0 : index
    %6 = vector.load %arg4[%c0_4, %c0_5] : memref<1x512xf32, #tpu.memory_space<vmem>>, vector<1x512xf32>
    %7 = vector.broadcast %6 : vector<1x512xf32> to vector<128x512xf32>
    %8 = arith.addf %5, %7 : vector<128x512xf32>
    %cst_6 = arith.constant 5.000000e-01 : f32
    %9 = vector.broadcast %cst_6 : f32 to vector<128x512xf32>
    %10 = arith.mulf %9, %8 : vector<128x512xf32>
    %cst_7 = arith.constant 4.471500e-02 : f32
    %11 = vector.broadcast %cst_7 : f32 to vector<128x512xf32>
    %12 = arith.mulf %11, %8 : vector<128x512xf32>
    %13 = arith.mulf %12, %8 : vector<128x512xf32>
    %14 = arith.mulf %13, %8 : vector<128x512xf32>
    %15 = arith.addf %8, %14 : vector<128x512xf32>
    %cst_8 = arith.constant 0.797884583 : f32
    %16 = vector.broadcast %cst_8 : f32 to vector<128x512xf32>
    %17 = arith.mulf %16, %15 : vector<128x512xf32>
    %18 = math.tanh %17 : vector<128x512xf32>
    %cst_9 = arith.constant 1.000000e+00 : f32
    %19 = vector.broadcast %cst_9 : f32 to vector<128x512xf32>
    %20 = arith.addf %19, %18 : vector<128x512xf32>
    %21 = arith.mulf %10, %20 : vector<128x512xf32>
    %c0_10 = arith.constant 0 : index
    %c0_11 = arith.constant 0 : index
    %22 = vector.load %arg8[%c0_10, %c0_11] : memref<128x256xf32, #tpu.memory_space<vmem>>, vector<128x256xf32>
    %c0_12 = arith.constant 0 : index
    %c0_13 = arith.constant 0 : index
    %23 = vector.load %arg5[%c0_12, %c0_13] : memref<512x256xf32, #tpu.memory_space<vmem>>, vector<512x256xf32>
    %cst_14 = arith.constant dense<0.000000e+00> : vector<128x256xf32>
    %24 = tpu.matmul %21, %23, %cst_14 {dimension_numbers = #tpu.dot_dimension_numbers<[1], [0], [0], [1], [0, 0, 1, 1], [], []>} : vector<128x512xf32>, vector<512x256xf32>, vector<128x256xf32> -> vector<128x256xf32>
    %25 = arith.addf %22, %24 : vector<128x256xf32>
    %c0_15 = arith.constant 0 : index
    %c0_16 = arith.constant 0 : index
    %26 = vector.load %arg8[%c0_15, %c0_16] : memref<128x256xf32, #tpu.memory_space<vmem>>, vector<128x256xf32>
    tpu.vector_store %arg8[%c0_15, %c0_16], %25 {strides = array<i32>} : memref<128x256xf32, #tpu.memory_space<vmem>>, vector<128x256xf32>,
    %c0_i32_17 = arith.constant 0 : i32
    %27 = arith.cmpi eq, %arg1, %c0_i32_17 : i32
    %28 = arith.extui %27 : i1 to i32
    %c0_i32_18 = arith.constant 0 : i32
    %29 = arith.cmpi ne, %28, %c0_i32_18 : i32
    scf.if %29 {
      %c0_19 = arith.constant 0 : index
      %c0_20 = arith.constant 0 : index
      %30 = vector.load %arg8[%c0_19, %c0_20] : memref<128x256xf32, #tpu.memory_space<vmem>>, vector<128x256xf32>
      %c0_21 = arith.constant 0 : index
      %c0_22 = arith.constant 0 : index
      %31 = vector.load %arg6[%c0_21, %c0_22] : memref<1x256xf32, #tpu.memory_space<vmem>>, vector<1x256xf32>
      %32 = vector.broadcast %31 : vector<1x256xf32> to vector<128x256xf32>
      %33 = arith.addf %30, %32 : vector<128x256xf32>
      %c0_23 = arith.constant 0 : index
      %c0_24 = arith.constant 0 : index
      %34 = vector.load %arg7[%c0_23, %c0_24] : memref<128x256xf32, #tpu.memory_space<vmem>>, vector<128x256xf32>
      tpu.vector_store %arg7[%c0_23, %c0_24], %33 {strides = array<i32>} : memref<128x256xf32, #tpu.memory_space<vmem>>, vector<128x256xf32>,
    } else {
    }
    return
  }
  func.func @transform_0(%arg0: i32, %arg1: i32) -> (i32, i32) {
    %c0_i32 = arith.constant 0 : i32
    %c0_i32_0 = arith.constant 0 : i32
    return %arg0, %c0_i32 : i32, i32
  }
  func.func @transform_1(%arg0: i32, %arg1: i32) -> (i32, i32) {
    %c0_i32 = arith.constant 0 : i32
    %c0_i32_0 = arith.constant 0 : i32
    return %c0_i32, %arg1 : i32, i32
  }
  func.func @transform_2(%arg0: i32, %arg1: i32) -> (i32, i32) {
    %c0_i32 = arith.constant 0 : i32
    %c0_i32_0 = arith.constant 0 : i32
    return %c0_i32, %arg1 : i32, i32
  }
  func.func @transform_3(%arg0: i32, %arg1: i32) -> (i32, i32) {
    %c0_i32 = arith.constant 0 : i32
    %c0_i32_0 = arith.constant 0 : i32
    return %arg1, %c0_i32 : i32, i32
  }
  func.func @transform_4(%arg0: i32, %arg1: i32) -> (i32, i32) {
    %c0_i32 = arith.constant 0 : i32
    %c0_i32_0 = arith.constant 0 : i32
    %c0_i32_1 = arith.constant 0 : i32
    return %c0_i32, %c0_i32_0 : i32, i32
  }
  func.func @transform_5(%arg0: i32, %arg1: i32) -> (i32, i32) {
    %c0_i32 = arith.constant 0 : i32
    %c0_i32_0 = arith.constant 0 : i32
    return %arg0, %c0_i32 : i32, i32
  }
}

</mosaic_0001>

<bundles_post_ra>
// kernel: tpu_custom_call.1
= control target key start
LH: loop header
LB: loop body
LE: loop exit
PB: predicated region body
PF: predicated region fallthrough
CT: control target
= control target key end

     0   :  { %s4612_s0 = inlined_call_operand.hbm [shape: f32[256,256], index: 0, kind: input, shape index: {}]   ;;  %s4613_s1 = inlined_call_operand.hbm [shape: f32[256,512], index: 1, kind: input, shape index: {}]   ;;  %s4614_s2 = inlined_call_operand.hbm [shape: f32[1,512], index: 2, kind: input, shape index: {}]   ;;  %s4615_s3 = inlined_call_operand.hbm [shape: f32[512,256], index: 3, kind: input, shape index: {}]   ;;  %s4616_s4 = inlined_call_operand.hbm [shape: f32[1,256], index: 4, kind: input, shape index: {}]   ;;  %s4617_s5 = inlined_call_operand.hbm [shape: f32[256,256], index: 5, kind: output, shape index: {}]  }
   0x1   :  { %4660 = sst [smem:[#allocation52_spill]] %s4613_s1 }
   0x2   :  { %10 = vsyncpa [#allocation4], 0 }
   0x3   :  { %12 = vsyncpa [#allocation4 + $0x1], 0 }
   0x4   :  { %13 = vsyncpa [#allocation7], 0 }
   0x5   :  { %14 = vsyncpa [#allocation10], 0 }
   0x6   :  { %15 = vsyncpa [#allocation5], 0 }
   0x7   :  { %17 = vsyncpa [#allocation5 + $0x1], 0  ;;  %s3083_s18 = smov 0   ;;  %s3085_s19 = smov 0  }
   0x8   :  { %s3087_s20 = smov 0   ;;  %s3089_s21 = smov 0  }
   0x9   :  { %s3091_s22 = smov 0   ;;  %s3093_s23 = smov 0  }
   0xa LB: > { %s2253_s24 = sadd.s32 4294967295, %s3039_s23   ;;  %s2254_s25 = sadd.s32 4294967294, %s3039_s23   ;;  %s3039_s23 = sphi %s3093_s23, %s23_s23   ;;  %s3035_s22 = sphi %s3091_s22, %s4781_s22   ;;  %s3031_s21 = sphi %s3089_s21, %s4780_s21   ;;  %s3027_s20 = sphi %s3087_s20, %s4779_s20   ;;  %s3023_s19 = sphi %s3085_s19, %s4778_s19   ;;  %s3019_s18 = sphi %s3083_s18, %s4777_s18  }
   0xb   : > { %p55_p0 = scmp.ne.s32.totalorder %s3023_s19, %s3019_s18  ;;  %p3117_p1 = scmp.eq.s32.totalorder %s2253_s24, 0 }
   0xc   : > { %p3121_p2 = scmp.eq.s32.totalorder %s2253_s24, 1  ;;  %p184_p3 = scmp.eq.s32.totalorder %s2254_s25, 1 }
   0xd   : > { %s4661_s26 = scalar_select %p3117_p1, 1, 0 }
   0xe   : > { %s4662_s27 = scalar_select %p3121_p2, 1, 0 }
   0xf   : > { %p3127_p4 = por %p3117_p1, %p55_p0  ;;  %p2255_p5 = scmp.ge.s32.totalorder %s3039_s23, 1 }
  0x10   : > { %p3132_p6 = por %p184_p3, %p55_p0  ;;  %p191_p7 = scmp.lt.s32.totalorder %s3039_s23, 3 }
  0x11   : > { %s4663_s28 = scalar_select %p3127_p4, 1, 0 }
  0x12   : > { %s4664_s29 = scalar_select %p3132_p6, 1, 0 }
  0x13   : > { %p3137_p8 = pnand %p2255_p5, %p191_p7  ;;  %s3041_s6 = smov [#allocation6]  }
  0x14   : > { %4665 = sst [smem:[#allocation17_spill]] %s4664_s29  ;;  %s206_s7 = sshll.u32 %s3041_s6, 4  ;;  %s3141_s7 = int_to_ptr.vmem [resolvable:$true] %s206_s7 }
  0x15   : > { %s4666_s30 = scalar_select %p3137_p8, 1, 0 }
  0x16   : > { %p2590_p9 = pneg %p3137_p8  ;;  %s3042_s9 = smov [#allocation9]  }
  0x17   : > { %s237_s10 = sshll.u32 %s3042_s9, 4  ;;  %s4668_s1 = sld [smem:[#allocation52_spill]]  ;;  %s3152_s10 = int_to_ptr.vmem [resolvable:$true] %s237_s10 }
  0x18   : > { %p3148_p11 = pnand %p2590_p9, %p3117_p1 }
  0x1a   : > { %p3162_p13 = pneg %p3148_p11 }
  0x1d   : > { %s2807_s13 = scalar_lea.hbm %s4668_s1, 16384 }
  0x1e   : > { %p2808_p12 = scmp.ne.s32.totalorder %s4668_s1, %s2807_s13  ;;  %p2814_p5 = scmp.lt.u32.totalorder %s2807_s13, %s4668_s1 }
  0x20   : > { %p2810_p0 = pnand %p3162_p13, %p2808_p12 }
  0x22   : > { %p2811_p3 = pneg %p2810_p0 }
  0x24   : > { %p2816_p7 = pnand %p2814_p5, %p2811_p3 }
  0x26   : > { %2819 = shalt.err (!%p2816_p7)
}
  0x27   : > { %s2820_s25 = scalar_lea.vmem %s3141_s7, 16384  ;;  %p2828_p1 = scmp.lt.s32.totalorder %s3141_s7, %s3141_s7 }
  0x28   : > { %p2821_p9 = scmp.ne.s32.totalorder %s3141_s7, %s2820_s25  ;;  %p2829_p4 = scmp.lt.s32.totalorder %s2820_s25, %s2820_s25 }
  0x2a   : > { %p2823_p10 = pnand %p2821_p9, %p3162_p13  ;;  %p2830_p12 = por %p2829_p4, %p2828_p1 }
  0x2c   : > { %p2824_p6 = pneg %p2823_p10 }
  0x2e   : > { %p2831_p0 = pnand %p2830_p12, %p2824_p6 }
  0x30   : > { %2834 = shalt.err (!%p2831_p0)
}
  0x31   : > { %s3043_s6 = smov 512   ;;  %s3044_s9 = smov 32  }
  0x32   : > { %2593 = dma.hbm_to_vmem [thread:$0]  (!%p3148_p11), %s4668_s1, 16384, %s3141_s7, [#allocation7], %s3043_s6, %s3043_s6, %s3044_s9  }
  0x33   : > { %s2835_s15 = scalar_lea.hbm %s4615_s3, 16384 }
  0x34   : > { %p2836_p1 = scmp.ne.s32.totalorder %s4615_s3, %s2835_s15  ;;  %p2842_p10 = scmp.lt.u32.totalorder %s2835_s15, %s4615_s3 }
  0x36   : > { %p2838_p4 = pnand %p2836_p1, %p3162_p13 }
  0x38   : > { %p2839_p6 = pneg %p2838_p4 }
  0x3a   : > { %p2844_p3 = pnand %p2842_p10, %p2839_p6 }
  0x3c   : > { %2847 = shalt.err (!%p2844_p3)
}
  0x3d   : > { %s2848_s7 = scalar_lea.vmem %s3152_s10, 16384  ;;  %p2856_p12 = scmp.lt.s32.totalorder %s3152_s10, %s3152_s10 }
  0x3e   : > { %p2849_p5 = scmp.ne.s32.totalorder %s3152_s10, %s2848_s7  ;;  %p2857_p0 = scmp.lt.s32.totalorder %s2848_s7, %s2848_s7 }
  0x40   : > { %p2851_p7 = pnand %p2849_p5, %p3162_p13  ;;  %p2858_p1 = por %p2857_p0, %p2856_p12 }
  0x42   : > { %p2852_p9 = pneg %p2851_p7 }
  0x44   : > { %p2859_p4 = pnand %p2858_p1, %p2852_p9 }
  0x46   : > { %2862 = shalt.err (!%p2859_p4)
}
  0x47   : > { %s3045_s6 = smov 256   ;;  %s3046_s29 = smov 16  }
  0x48   : > { %2599 = dma.hbm_to_vmem [thread:$0]  (!%p3148_p11), %s4615_s3, 16384, %s3152_s10, [#allocation10], %s3045_s6, %s3045_s6, %s3046_s29  }
  0x49   : > { %s3047_s12 = smov [#allocation8]   ;;  %s3048_s14 = smov [#allocation11]  }
  0x4a   : > { %s223_s13 = sshll.u32 %s3047_s12, 4  ;;  %s251_s15 = sshll.u32 %s3048_s14, 4  ;;  %s224_s13 = int_to_ptr.vmem [resolvable:$true] %s223_s13  ;;  %s3209_s15 = int_to_ptr.vmem [resolvable:$true] %s251_s15 }
  0x4b   : > { %s2863_s25 = scalar_lea.hbm %s4614_s2, 64 }
  0x4c   : > { %p2864_p6 = scmp.ne.s32.totalorder %s4614_s2, %s2863_s25  ;;  %p2870_p5 = scmp.lt.u32.totalorder %s2863_s25, %s4614_s2 }
  0x4e   : > { %p2866_p10 = pnand %p2864_p6, %p3162_p13 }
  0x50   : > { %p2867_p3 = pneg %p2866_p10 }
  0x52   : > { %p2872_p7 = pnand %p2870_p5, %p2867_p3 }
  0x54   : > { %2875 = shalt.err (!%p2872_p7)
}
  0x55   : > { %s2876_s11 = scalar_lea.vmem %s224_s13, 64  ;;  %p2884_p1 = scmp.lt.s32.totalorder %s224_s13, %s224_s13 }
  0x56   : > { %p2877_p9 = scmp.ne.s32.totalorder %s224_s13, %s2876_s11  ;;  %p2885_p4 = scmp.lt.s32.totalorder %s2876_s11, %s2876_s11 }
  0x58   : > { %p2879_p12 = pnand %p2877_p9, %p3162_p13  ;;  %p2886_p8 = por %p2885_p4, %p2884_p1 }
  0x5a   : > { %p2880_p0 = pneg %p2879_p12 }
  0x5c   : > { %p2887_p2 = pnand %p2886_p8, %p2880_p0 }
  0x5e   : > { %2890 = shalt.err (!%p2887_p2)
}
  0x5f   : > { %2596 = dma.hbm_to_vmem [thread:$0]  (!%p3148_p11), %s4614_s2, 64, %s224_s13, [#allocation7]  }
  0x60   : > { %s2891_s24 = scalar_lea.hbm %s4616_s4, 32 }
  0x61   : > { %p2892_p6 = scmp.ne.s32.totalorder %s4616_s4, %s2891_s24  ;;  %p2898_p2 = scmp.lt.u32.totalorder %s2891_s24, %s4616_s4 }
  0x63   : > { %p2894_p10 = pnand %p2892_p6, %p3162_p13 }
  0x65   : > { %p2895_p3 = pneg %p2894_p10 }
  0x67   : > { %p2900_p8 = pnand %p2898_p2, %p2895_p3 }
  0x69   : > { %2903 = shalt.err (!%p2900_p8)
}
  0x6a   : > { %s2904_s13 = scalar_lea.vmem %s3209_s15, 32  ;;  %p2912_p12 = scmp.lt.s32.totalorder %s3209_s15, %s3209_s15 }
  0x6b   : > { %p2905_p5 = scmp.ne.s32.totalorder %s3209_s15, %s2904_s13  ;;  %p2913_p0 = scmp.lt.s32.totalorder %s2904_s13, %s2904_s13 }
  0x6d   : > { %p2907_p7 = pnand %p2905_p5, %p3162_p13  ;;  %p2914_p1 = por %p2913_p0, %p2912_p12 }
  0x6f   : > { %p2908_p9 = pneg %p2907_p7 }
  0x71   : > { %p2915_p4 = pnand %p2914_p1, %p2908_p9 }
  0x73   : > { %2918 = shalt.err (!%p2915_p4)
}
  0x74   : > { %2602 = dma.hbm_to_vmem [thread:$0]  (!%p3148_p11), %s4616_s4, 32, %s3209_s15, [#allocation10]  }
  0x75   : > { %s35_s16 = sadd.s32 1, %s3035_s22  ;;  %s42_s12 = sadd.s32 1, %s3027_s20 }
  0x76   : > { %p37_p13 = scmp.ge.s32.totalorder %s35_s16, 2  ;;  %p49_p6 = scmp.ne.s32.totalorder %s3027_s20, %s3023_s19 }
  0x77   : > { %p50_p10 = scmp.eq.s32.totalorder %s3039_s23, 0  ;;  %p2615_p3 = scmp.lt.s32.totalorder %s3039_s23, 2 }
  0x78   : > { %s4783_s16 = smov (%p37_p13, %s35_s16), 0  ;;  %p4670_p8 = scmp.ne.s32.totalorder %s4662_s27, 0 }
  0x79   : > { %p51_p2 = por %p50_p10, %p49_p6  ;;  %s39_s14 = ssub.s32 %s3035_s22, %s4783_s16 }
  0x7a   : > { %p3262_p5 = por %p4670_p8, %p49_p6  ;;  %s262_s17 = sand.u32 1, %s3027_s20  }
  0x7b   : > { %p40_p7 = scmp.eq.s32.totalorder %s39_s14, 0  ;;  %s2261_s15 = sshll.u32 %s262_s17, 8 }
  0x7c   : > { %s2279_s24 = sshll.u32 %s3035_s22, 12  ;;  %s266_s27 = scalar_lea.vmem [#allocation3], %s2261_s15 }
  0x7d   : > { %s3271_s25 = scalar_select %p40_p7, %s3027_s20, %s42_s12  }
  0x7e   : > { %s3276_s10 = scalar_lea.hbm %s4612_s0, %s2279_s24  ;;  %s274_s13 = sshll.u32 %s266_s27, 4  ;;  %s3284_s13 = int_to_ptr.vmem [resolvable:$true] %s274_s13 }
  0x7f   : > { %p3280_p11 = pnand %p2615_p3, %p51_p2  ;;  %s3286_s1 = scalar_lea.sflag [#allocation4], %s262_s17 }
  0x80   : > { %s2919_s12 = scalar_lea.hbm %s3276_s10, 4096  ;;  %s2924_s24 = scalar_lea.hbm %s4612_s0, 8192 }
  0x81   : > { %p2920_p9 = scmp.ne.s32.totalorder %s3276_s10, %s2919_s12  ;;  %p2921_p12 = pneg %p3280_p11 }
  0x82   : > { %p2925_p4 = scmp.lt.u32.totalorder %s3276_s10, %s4612_s0  ;;  %p2926_p13 = scmp.lt.u32.totalorder %s2924_s24, %s2919_s12 }
  0x83   : > { %p2922_p0 = pnand %p2921_p12, %p2920_p9  ;;  %p2928_p10 = scmp.lt.u32.totalorder %s2919_s12, %s3276_s10 }
  0x84   : > { %p2927_p6 = por %p2926_p13, %p2925_p4 }
  0x85   : > { %p2923_p1 = pneg %p2922_p0 }
  0x86   : > { %p2929_p3 = por %p2928_p10, %p2927_p6 }
  0x88   : > { %p2930_p2 = pnand %p2929_p3, %p2923_p1 }
  0x8a   : > { %2933 = shalt.err (!%p2930_p2)
}
  0x8b   : > { %s2934_s17 = scalar_lea.vmem %s3284_s13, 4096  ;;  %s3049_s27 = smov [#allocation3]  }
  0x8c   : > { %p2935_p8 = scmp.ne.s32.totalorder %s3284_s13, %s2934_s17  ;;  %s2939_s14 = sshll.u32 %s3049_s27, 4  ;;  %s2940_s14 = int_to_ptr.vmem [resolvable:$false] %s2939_s14 }
  0x8d   : > { %s2941_s15 = scalar_lea.vmem %s2940_s14, 8192  ;;  %p2942_p0 = scmp.lt.s32.totalorder %s3284_s13, %s2940_s14 }
  0x8e   : > { %p2937_p7 = pnand %p2935_p8, %p2921_p12  ;;  %p2943_p4 = scmp.lt.s32.totalorder %s2941_s15, %s2934_s17 }
  0x90   : > { %p2938_p9 = pneg %p2937_p7  ;;  %p2944_p13 = por %p2943_p4, %p2942_p0 }
  0x92   : > { %p2945_p6 = pnand %p2944_p13, %p2938_p9 }
  0x94   : > { %2948 = shalt.err (!%p2945_p6)
}
  0x95   : > { %2606 = dma.hbm_to_vmem [thread:$0]  (!%p3280_p11), %s3276_s10, 4096, %s3284_s13, %s3286_s1, %s3045_s6, %s3045_s6, %s3046_s29  }
  0x96   : > { %p4673_p12 = scmp.ne.s32.totalorder %s4666_s30, 0 }
  0x98   : > { %286 = sbr.rel (%p4673_p12) target bundleno = 868 (0x364), region = 40 }
  0x9f   : > { %s3320_s12 = sand.u32 1, %s3023_s19   ;;  %p4674_p1 = scmp.ne.s32.totalorder %s4663_s28, 0 }
  0xa0   : > { %s2266_s24 = sshll.u32 %s3320_s12, 8  ;;  %s289_s7 = scalar_lea.sflag [#allocation4], %s3320_s12 }
  0xa1   : > { %s3326_s11 = scalar_lea.vmem [#allocation3], %s2266_s24 }
  0xa2   : > { %3002 = dma.done.wait (%p4674_p1), %s289_s7, 4096  }
  0xa3   : > { %3004 = vsyncadd (%p4674_p1), %s289_s7, 4294963200  ;;  %p4675_p11 = scmp.ne.s32.totalorder %s4661_s26, 0 }
  0xa5   : > { %3006 = dma.done.wait (%p4675_p11), [#allocation7], 16448  }
  0xa6   : > { %3008 = vsyncadd (%p4675_p11), [#allocation7], 4294950848 }
  0xa7   : > { %3010 = dma.done.wait (%p4675_p11), [#allocation10], 16416  }
  0xa8   : > { %3012 = vsyncadd (%p4675_p11), [#allocation10], 4294950880  ;;  %v409_v0 = vld [vmem:[#allocation6 + $0x8] sm:$0xff]  ;;  %v408_v2 = vld [vmem:[#allocation6] sm:$0xff]  ;;  %s4492_s26 = scalar_lea.vmem [#allocation12], %s2266_s24  ;;  %s2281_s28 = sshll.u32 %s3031_s21, 12 }
  0xa9   : > { %v413_v1 = vld [vmem:[#allocation6 + $0x28] sm:$0xff]  ;;  %v412_v4 = vld [vmem:[#allocation6 + $0x20] sm:$0xff]  ;;  %s2128_s30 = sshll.u32 %s4492_s26, 4  ;;  %s4558_s10 = scalar_lea.hbm %s4617_s5, %s2281_s28  ;;  %s4560_s30 = int_to_ptr.vmem [resolvable:$true] %s2128_s30 }
  0xaa   : > { %v2282_v3 = vpack.c.bf16 %v413_v1, %v409_v0  ;;  %v417_v5 = vld [vmem:[#allocation6 + $0x48] sm:$0xff]  ;;  %v2284_v7 = vpack.c.bf16 %v412_v4, %v408_v2  ;;  %v416_v9 = vld [vmem:[#allocation6 + $0x40] sm:$0xff]  ;;  %s2114_s21 = scalar_lea.sflag [#allocation5], %s3320_s12  ;;  %s2949_s13 = scalar_lea.vmem %s4560_s30, 4096 }
  0xab   : > { %v421_v6 = vld [vmem:[#allocation6 + $0x68] sm:$0xff]  ;;  %v420_v10 = vld [vmem:[#allocation6 + $0x60] sm:$0xff]  ;;  %p2950_p10 = scmp.ne.s32.totalorder %s4560_s30, %s2949_s13  ;;  %s3050_s1 = smov [#allocation12]  }
  0xac   : > { %v2286_v8 = vpack.c.bf16 %v421_v6, %v417_v5  ;;  %v425_v11 = vld [vmem:[#allocation6 + $0x88] sm:$0xff]  ;;  %2283 = vmatprep.subr.bf16.mxu1 %v2282_v3  ;;  %v2288_v13 = vpack.c.bf16 %v420_v10, %v416_v9  ;;  %v424_v15 = vld [vmem:[#allocation6 + $0x80] sm:$0xff]  ;;  %s2953_s9 = sshll.u32 %s3050_s1, 4  ;;  %s2954_s9 = int_to_ptr.vmem [resolvable:$false] %s2953_s9 }
  0xad   : > { %v429_v12 = vld [vmem:[#allocation6 + $0xa8] sm:$0xff]  ;;  %2285 = vmatpush1.bf16.msra.mxu1 %v2284_v7  ;;  %v428_v16 = vld [vmem:[#allocation6 + $0xa0] sm:$0xff]  ;;  %p2951_p3 = pnand %p2950_p10, %p3262_p5  ;;  %s2955_s17 = scalar_lea.vmem %s2954_s9, 8192 }
  0xae   : > { %2287 = vmatprep.subr.bf16.mxu1 %v2286_v8  ;;  %v2290_v14 = vpack.c.bf16 %v429_v12, %v425_v11  ;;  %v433_v17 = vld [vmem:[#allocation6 + $0xc8] sm:$0xff]  ;;  %v2292_v19 = vpack.c.bf16 %v428_v16, %v424_v15  ;;  %v432_v21 = vld [vmem:[#allocation6 + $0xc0] sm:$0xff]  ;;  %p2956_p8 = scmp.lt.s32.totalorder %s4560_s30, %s2954_s9  ;;  %p2957_p7 = scmp.lt.s32.totalorder %s2955_s17, %s2949_s13 }
  0xaf   : > { %v437_v18 = vld [vmem:[#allocation6 + $0xe8] sm:$0xff]  ;;  %v436_v22 = vld [vmem:[#allocation6 + $0xe0] sm:$0xff]  ;;  %p2952_p2 = pneg %p2951_p3 }
  0xb0   : > { %v2294_v20 = vpack.c.bf16 %v437_v18, %v433_v17  ;;  %v441_v23 = vld [vmem:[#allocation6 + $0x108] sm:$0xff]  ;;  %v2296_v25 = vpack.c.bf16 %v436_v22, %v432_v21  ;;  %v440_v27 = vld [vmem:[#allocation6 + $0x100] sm:$0xff]  ;;  %p2958_p9 = por %p2957_p7, %p2956_p8 }
  0xb1   : > { %2289 = vmatpush1.bf16.msra.mxu1 %v2288_v13  ;;  %v445_v24 = vld [vmem:[#allocation6 + $0x128] sm:$0xff]  ;;  %v444_v28 = vld [vmem:[#allocation6 + $0x120] sm:$0xff] }
  0xb2   : > { %2291 = vmatprep.subr.bf16.mxu1 %v2290_v14  ;;  %v2298_v26 = vpack.c.bf16 %v445_v24, %v441_v23  ;;  %v449_v29 = vld [vmem:[#allocation6 + $0x148] sm:$0xff]  ;;  %v2300_v31 = vpack.c.bf16 %v444_v28, %v440_v27  ;;  %v448_v33 = vld [vmem:[#allocation6 + $0x140] sm:$0xff]  ;;  %p2959_p0 = pnand %p2958_p9, %p2952_p2 }
  0xb3   : > { %v453_v30 = vld [vmem:[#allocation6 + $0x168] sm:$0xff]  ;;  %v452_v34 = vld [vmem:[#allocation6 + $0x160] sm:$0xff] }
  0xb4   : > { %v2302_v32 = vpack.c.bf16 %v453_v30, %v449_v29  ;;  %v457_v35 = vld [vmem:[#allocation6 + $0x188] sm:$0xff]  ;;  %v2304_v37 = vpack.c.bf16 %v452_v34, %v448_v33  ;;  %v456_v39 = vld [vmem:[#allocation6 + $0x180] sm:$0xff]  ;;  %v415_v33 = vld [vmem:[#allocation6 + $0x38] sm:$0xff] }
  0xb5   : > { %2293 = vmatpush1.bf16.msra.mxu1 %v2292_v19  ;;  %v461_v36 = vld [vmem:[#allocation6 + $0x1a8] sm:$0xff]  ;;  %v460_v40 = vld [vmem:[#allocation6 + $0x1a0] sm:$0xff] }
  0xb6   : > { %2295 = vmatprep.subr.bf16.mxu1 %v2294_v20  ;;  %v2306_v38 = vpack.c.bf16 %v461_v36, %v457_v35  ;;  %v3341_v41 = vld [vmem:[%s3326_s11 + $0x8] sm:$0xff]  ;;  %v2308_v44 = vpack.c.bf16 %v460_v40, %v456_v39  ;;  %v464_v46 = vld [vmem:[#allocation6 + $0x1c0] sm:$0xff]  ;;  %v410_v36 = vld [vmem:[#allocation6 + $0x10] sm:$0xff] }
  0xb7   : > { %v465_v42 = vld [vmem:[#allocation6 + $0x1c8] sm:$0xff]  ;;  %622 = vmatprep.mubr.f32.mxu1 %v3341_v41  ;;  %v468_v47 = vld [vmem:[#allocation6 + $0x1e0] sm:$0xff]  ;;  %v419_v39 = vld [vmem:[#allocation6 + $0x58] sm:$0xff] }
  0xb8   : > { %v469_v43 = vld [vmem:[#allocation6 + $0x1e8] sm:$0xff]  ;;  %v2312_v50 = vpack.c.bf16 %v468_v47, %v464_v46  ;;  %v472_v52 = vld [vmem:[#allocation6 + $0x200] sm:$0xff]  ;;  %v423_v40 = vld [vmem:[#allocation6 + $0x78] sm:$0xff] }
  0xb9   : > { %2297 = vmatpush1.bf16.msra.mxu1 %v2296_v25  ;;  %v2310_v45 = vpack.c.bf16 %v469_v43, %v465_v42  ;;  %v473_v48 = vld [vmem:[#allocation6 + $0x208] sm:$0xff]  ;;  %v476_v53 = vld [vmem:[#allocation6 + $0x220] sm:$0xff]  ;;  %v3348_v42 = vld [vmem:[%s3326_s11 + $0x18] sm:$0xff] }
  0xba   : > { %2299 = vmatprep.subr.bf16.mxu1 %v2298_v26  ;;  %v477_v49 = vld [vmem:[#allocation6 + $0x228] sm:$0xff]  ;;  %v2316_v56 = vpack.c.bf16 %v476_v53, %v472_v52  ;;  %v480_v58 = vld [vmem:[#allocation6 + $0x240] sm:$0xff]  ;;  %v418_v43 = vld [vmem:[#allocation6 + $0x50] sm:$0xff]  ;;  %v2350_v53 = vpack.c.bf16 %v423_v40, %v419_v39 }
  0xbb   : > { %v2314_v51 = vpack.c.bf16 %v477_v49, %v473_v48  ;;  %v481_v54 = vld [vmem:[#allocation6 + $0x248] sm:$0xff]  ;;  %v484_v59 = vld [vmem:[#allocation6 + $0x260] sm:$0xff] }
  0xbc   : > { %v485_v55 = vld [vmem:[#allocation6 + $0x268] sm:$0xff]  ;;  %v2320_v62 = vpack.c.bf16 %v484_v59, %v480_v58  ;;  %v488_v0 = vld [vmem:[#allocation6 + $0x280] sm:$0xff]  ;;  %v1494_v58 = vld [vmem:[#allocation9 + $0x30] sm:$0xff] }
  0xbd   : > { %2301 = vmatpush1.bf16.msra.mxu1 %v2300_v31  ;;  %v2318_v57 = vpack.c.bf16 %v485_v55, %v481_v54  ;;  %v489_v60 = vld [vmem:[#allocation6 + $0x288] sm:$0xff]  ;;  %v492_v1 = vld [vmem:[#allocation6 + $0x2a0] sm:$0xff]  ;;  %v427_v54 = vld [vmem:[#allocation6 + $0x98] sm:$0xff] }
  0xbe   : > { %2303 = vmatprep.subr.bf16.mxu1 %v2302_v32  ;;  %v493_v61 = vld [vmem:[#allocation6 + $0x2a8] sm:$0xff]  ;;  %v2324_v4 = vpack.c.bf16 %v492_v1, %v488_v0  ;;  %v496_v6 = vld [vmem:[#allocation6 + $0x2c0] sm:$0xff]  ;;  %v411_v32 = vld [vmem:[#allocation6 + $0x18] sm:$0xff] }
  0xbf   : > { %v2322_v63 = vpack.c.bf16 %v493_v61, %v489_v60  ;;  %v497_v2 = vld [vmem:[#allocation6 + $0x2c8] sm:$0xff]  ;;  %v500_v7 = vld [vmem:[#allocation6 + $0x2e0] sm:$0xff]  ;;  %v2346_v35 = vpack.c.bf16 %v415_v33, %v411_v32  ;;  %v431_v59 = vld [vmem:[#allocation6 + $0xb8] sm:$0xff] }
  0xc0   : > { %v501_v3 = vld [vmem:[#allocation6 + $0x2e8] sm:$0xff]  ;;  %v2328_v10 = vpack.c.bf16 %v500_v7, %v496_v6  ;;  %v504_v12 = vld [vmem:[#allocation6 + $0x300] sm:$0xff]  ;;  %v430_v6 = vld [vmem:[#allocation6 + $0xb0] sm:$0xff] }
  0xc1   : > { %2305 = vmatpush1.bf16.msra.mxu1 %v2304_v37  ;;  %v2326_v5 = vpack.c.bf16 %v501_v3, %v497_v2  ;;  %v505_v8 = vld [vmem:[#allocation6 + $0x308] sm:$0xff]  ;;  %v508_v13 = vld [vmem:[#allocation6 + $0x320] sm:$0xff]  ;;  %v414_v37 = vld [vmem:[#allocation6 + $0x30] sm:$0xff] }
  0xc2   : > { %2307 = vmatprep.subr.bf16.mxu1 %v2306_v38  ;;  %v509_v9 = vld [vmem:[#allocation6 + $0x328] sm:$0xff]  ;;  %v2332_v16 = vpack.c.bf16 %v508_v13, %v504_v12  ;;  %v512_v18 = vld [vmem:[#allocation6 + $0x340] sm:$0xff]  ;;  %v2348_v48 = vpack.c.bf16 %v414_v37, %v410_v36  ;;  %v1498_v3 = vld [vmem:[#allocation9 + $0x50] sm:$0xff] }
  0xc3   : > { %v2330_v11 = vpack.c.bf16 %v509_v9, %v505_v8  ;;  %v513_v14 = vld [vmem:[#allocation6 + $0x348] sm:$0xff]  ;;  %v516_v19 = vld [vmem:[#allocation6 + $0x360] sm:$0xff]  ;;  %v435_v7 = vld [vmem:[#allocation6 + $0xd8] sm:$0xff] }
  0xc4   : > { %v517_v15 = vld [vmem:[#allocation6 + $0x368] sm:$0xff]  ;;  %v2336_v22 = vpack.c.bf16 %v516_v19, %v512_v18  ;;  %v520_v24 = vld [vmem:[#allocation6 + $0x380] sm:$0xff]  ;;  %v439_v9 = vld [vmem:[#allocation6 + $0xf8] sm:$0xff] }
  0xc5   : > { %2309 = vmatpush1.bf16.msra.mxu1 %v2308_v44  ;;  %v2334_v17 = vpack.c.bf16 %v517_v15, %v513_v14  ;;  %v521_v20 = vld [vmem:[#allocation6 + $0x388] sm:$0xff]  ;;  %v524_v25 = vld [vmem:[#allocation6 + $0x3a0] sm:$0xff]  ;;  %v422_v44 = vld [vmem:[#allocation6 + $0x70] sm:$0xff]  ;;  %v2358_v18 = vpack.c.bf16 %v439_v9, %v435_v7 }
  0xc6   : > { %2311 = vmatprep.subr.bf16.mxu1 %v2310_v45  ;;  %v525_v21 = vld [vmem:[#allocation6 + $0x3a8] sm:$0xff]  ;;  %v2340_v28 = vpack.c.bf16 %v524_v25, %v520_v24  ;;  %v528_v30 = vld [vmem:[#allocation6 + $0x3c0] sm:$0xff]  ;;  %v2352_v0 = vpack.c.bf16 %v422_v44, %v418_v43  ;;  %v3364_v15 = vld [vmem:[%s3326_s11 + $0x38] sm:$0xff] }
  0xc7   : > { %v2338_v23 = vpack.c.bf16 %v525_v21, %v521_v20  ;;  %v529_v26 = vld [vmem:[#allocation6 + $0x3c8] sm:$0xff]  ;;  %v532_v31 = vld [vmem:[#allocation6 + $0x3e0] sm:$0xff]  ;;  %v434_v19 = vld [vmem:[#allocation6 + $0xd0] sm:$0xff] }
  0xc8   : > { %v533_v27 = vld [vmem:[#allocation6 + $0x3e8] sm:$0xff]  ;;  %v2344_v34 = vpack.c.bf16 %v532_v31, %v528_v30  ;;  %v3345_v38 = vld [vmem:[%s3326_s11] sm:$0xff]  ;;  %v438_v20 = vld [vmem:[#allocation6 + $0xf0] sm:$0xff] }
  0xc9   : > { %2313 = vmatpush1.bf16.msra.mxu1 %v2312_v50  ;;  %v2342_v29 = vpack.c.bf16 %v533_v27, %v529_v26  ;;  %v1489_v45 = vld [vmem:[#allocation9 + $0x8] sm:$0xff]  ;;  %v1491_v46 = vld [vmem:[#allocation9 + $0x18] sm:$0xff]  ;;  %v1488_v47 = vld [vmem:[#allocation9] sm:$0xff] }
  0xca   : > { %2315 = vmatprep.subr.bf16.mxu1 %v2314_v51  ;;  %v2410_v49 = vpack.c.bf16 %v1491_v46, %v1489_v45  ;;  %v1490_v50 = vld [vmem:[#allocation9 + $0x10] sm:$0xff]  ;;  %v1493_v51 = vld [vmem:[#allocation9 + $0x28] sm:$0xff]  ;;  %v1495_v52 = vld [vmem:[#allocation9 + $0x38] sm:$0xff] }
  0xcb   : > { %v2412_v55 = vpack.c.bf16 %v1490_v50, %v1488_v47  ;;  %v1497_v60 = vld [vmem:[#allocation9 + $0x48] sm:$0xff]  ;;  %v1499_v61 = vld [vmem:[#allocation9 + $0x58] sm:$0xff]  ;;  %v1496_v2 = vld [vmem:[#allocation9 + $0x40] sm:$0xff] }
  0xcc   : > { %2411 = vmatprep.subr.bf16.mxu0 %v2410_v49  ;;  %v3356_v1 = vld [vmem:[%s3326_s11 + $0x28] sm:$0xff]  ;;  %v2418_v8 = vpack.c.bf16 %v1499_v61, %v1497_v60  ;;  %v3360_v12 = vld [vmem:[%s3326_s11 + $0x20] sm:$0xff]  ;;  %v2420_v13 = vpack.c.bf16 %v1498_v3, %v1496_v2  ;;  %v443_v21 = vld [vmem:[#allocation6 + $0x118] sm:$0xff] }
  0xcd   : > { %2317 = vmatpush1.bf16.msra.mxu1 %v2316_v56  ;;  %v2414_v56 = vpack.c.bf16 %v1495_v52, %v1493_v51  ;;  %2413 = vmatpush1.bf16.msra.mxu0 %v2412_v55  ;;  %v1505_v24 = vld [vmem:[#allocation9 + $0x88] sm:$0xff]  ;;  %v1507_v25 = vld [vmem:[#allocation9 + $0x98] sm:$0xff]  ;;  %v1504_v30 = vld [vmem:[#allocation9 + $0x80] sm:$0xff] }
  0xce   : > { %2319 = vmatprep.subr.bf16.mxu1 %v2318_v57  ;;  %v1492_v57 = vld [vmem:[#allocation9 + $0x20] sm:$0xff]  ;;  %v3368_v26 = vld [vmem:[%s3326_s11 + $0x30] sm:$0xff]  ;;  %v2426_v36 = vpack.c.bf16 %v1507_v25, %v1505_v24  ;;  %v455_v37 = vld [vmem:[#allocation6 + $0x178] sm:$0xff] }
  0xcf   : > { %2415 = vmatprep.subr.bf16.mxu0 %v2414_v56  ;;  %v1506_v31 = vld [vmem:[#allocation9 + $0x90] sm:$0xff]  ;;  %v1509_v39 = vld [vmem:[#allocation9 + $0xa8] sm:$0xff]  ;;  %v1511_v40 = vld [vmem:[#allocation9 + $0xb8] sm:$0xff] }
  0xd0   : > { %v442_v33 = vld [vmem:[#allocation6 + $0x110] sm:$0xff]  ;;  %v3376_v43 = vld [vmem:[%s3326_s11 + $0x40] sm:$0xff]  ;;  %v2428_v44 = vpack.c.bf16 %v1506_v31, %v1504_v30  ;;  %v3380_v46 = vld [vmem:[%s3326_s11 + $0x58] sm:$0xff] }
  0xd1   : > { %2321 = vmatpush1.bf16.msra.mxu1 %v2320_v62  ;;  %v3352_v62 = vld [vmem:[%s3326_s11 + $0x10] sm:$0xff]  ;;  %v1508_v47 = vld [vmem:[#allocation9 + $0xa0] sm:$0xff]  ;;  %v459_v52 = vld [vmem:[#allocation6 + $0x198] sm:$0xff] }
  0xd2   : > { %2323 = vmatprep.subr.bf16.mxu1 %v2322_v63  ;;  %v2416_v63 = vpack.c.bf16 %v1494_v58, %v1492_v57  ;;  %v450_v50 = vld [vmem:[#allocation6 + $0x150] sm:$0xff]  ;;  %v1515_v56 = vld [vmem:[#allocation9 + $0xd8] sm:$0xff]  ;;  %v3388_v60 = vld [vmem:[%s3326_s11 + $0x68] sm:$0xff] }
  0xd3   : > { %v454_v51 = vld [vmem:[#allocation6 + $0x170] sm:$0xff]  ;;  %v1512_v61 = vld [vmem:[#allocation9 + $0xc0] sm:$0xff]  ;;  %v1523_v24 = vld [vmem:[#allocation9 + $0x118] sm:$0xff] }
  0xd4   : > { %2417 = vmatpush1.bf16.msra.mxu0 %v2416_v63  ;;  %v1513_v55 = vld [vmem:[#allocation9 + $0xc8] sm:$0xff]  ;;  %v1514_v63 = vld [vmem:[#allocation9 + $0xd0] sm:$0xff]  ;;  %v3392_v9 = vld [vmem:[%s3326_s11 + $0x60] sm:$0xff] }
  0xd5   : > { %2325 = vmatpush1.bf16.msra.mxu1 %v2324_v4  ;;  %v2354_v4 = vpack.c.bf16 %v431_v59, %v427_v54  ;;  %2419 = vmatprep.subr.bf16.mxu0 %v2418_v8  ;;  %v463_v54 = vld [vmem:[#allocation6 + $0x1b8] sm:$0xff]  ;;  %v3384_v57 = vld [vmem:[%s3326_s11 + $0x50] sm:$0xff]  ;;  %v2368_v59 = vpack.c.bf16 %v454_v51, %v450_v50  ;;  %v1520_v30 = vld [vmem:[#allocation9 + $0x100] sm:$0xff] }
  0xd6   : > { %2327 = vmatprep.subr.bf16.mxu1 %v2326_v5  ;;  %v426_v5 = vld [vmem:[#allocation6 + $0x90] sm:$0xff]  ;;  %v1519_v8 = vld [vmem:[#allocation9 + $0xf8] sm:$0xff] }
  0xd7   : > { %v2356_v14 = vpack.c.bf16 %v430_v6, %v426_v5  ;;  %v458_v2 = vld [vmem:[#allocation6 + $0x190] sm:$0xff]  ;;  %v2434_v5 = vpack.c.bf16 %v1515_v56, %v1513_v55  ;;  %v471_v6 = vld [vmem:[#allocation6 + $0x1f8] sm:$0xff]  ;;  %v3420_v55 = vld [vmem:[%s3326_s11 + $0xa8] sm:$0xff] }
  0xd8   : > { %2421 = vmatpush1.bf16.msra.mxu0 %v2420_v13  ;;  %v462_v3 = vld [vmem:[#allocation6 + $0x1b0] sm:$0xff]  ;;  %v3396_v13 = vld [vmem:[%s3326_s11 + $0x78] sm:$0xff] }
  0xd9   : > { %2329 = vmatpush1.bf16.msra.mxu1 %v2328_v10  ;;  %v1501_v10 = vld [vmem:[#allocation9 + $0x68] sm:$0xff]  ;;  %v1522_v31 = vld [vmem:[#allocation9 + $0x110] sm:$0xff] }
  0xda   : > { %2331 = vmatprep.subr.bf16.mxu1 %v2330_v11  ;;  %v1503_v11 = vld [vmem:[#allocation9 + $0x78] sm:$0xff]  ;;  %v1517_v7 = vld [vmem:[#allocation9 + $0xe8] sm:$0xff] }
  0xdb   : > { %v486_v50 = vld [vmem:[#allocation6 + $0x270] sm:$0xff]  ;;  %v491_v51 = vld [vmem:[#allocation6 + $0x298] sm:$0xff] }
  0xdd   : > { %2333 = vmatpush1.bf16.msra.mxu1 %v2332_v16  ;;  %v1500_v16 = vld [vmem:[#allocation9 + $0x60] sm:$0xff] }
  0xde   : > { %2335 = vmatprep.subr.bf16.mxu1 %v2334_v17  ;;  %v1502_v17 = vld [vmem:[#allocation9 + $0x70] sm:$0xff] }
  0xdf   : > { %v2424_v27 = vpack.c.bf16 %v1502_v17, %v1500_v16  ;;  %v1518_v16 = vld [vmem:[#allocation9 + $0xf0] sm:$0xff] }
  0xe1   : > { %2337 = vmatpush1.bf16.msra.mxu1 %v2336_v22  ;;  %v2422_v22 = vpack.c.bf16 %v1503_v11, %v1501_v10  ;;  %v2436_v10 = vpack.c.bf16 %v1514_v63, %v1512_v61  ;;  %v2372_v11 = vpack.c.bf16 %v462_v3, %v458_v2  ;;  %v499_v61 = vld [vmem:[#allocation6 + $0x2d8] sm:$0xff] }
  0xe2   : > { %2339 = vmatprep.subr.bf16.mxu1 %v2338_v23  ;;  %v447_v23 = vld [vmem:[#allocation6 + $0x138] sm:$0xff] }
  0xe3   : > { %v2362_v32 = vpack.c.bf16 %v447_v23, %v443_v21  ;;  %2423 = vmatprep.subr.bf16.mxu0 %v2422_v22  ;;  %v2438_v21 = vpack.c.bf16 %v1519_v8, %v1517_v7  ;;  %v479_v22 = vld [vmem:[#allocation6 + $0x238] sm:$0xff]  ;;  %v1521_v23 = vld [vmem:[#allocation9 + $0x108] sm:$0xff] }
  0xe4   : > { %2425 = vmatpush1.bf16.msra.mxu0 %v2424_v27  ;;  %v3401_v27 = vld [vmem:[%s3326_s11 + $0x70] sm:$0xff]  ;;  %v503_v63 = vld [vmem:[#allocation6 + $0x2f8] sm:$0xff] }
  0xe5   : > { %2341 = vmatpush1.bf16.msra.mxu1 %v2340_v28  ;;  %v2360_v28 = vpack.c.bf16 %v438_v20, %v434_v19  ;;  %2427 = vmatprep.subr.bf16.mxu0 %v2426_v36  ;;  %v470_v19 = vld [vmem:[#allocation6 + $0x1f0] sm:$0xff]  ;;  %v475_v20 = vld [vmem:[#allocation6 + $0x218] sm:$0xff]  ;;  %v2442_v36 = vpack.c.bf16 %v1523_v24, %v1521_v23 }
  0xe6   : > { %2343 = vmatprep.subr.bf16.mxu1 %v2342_v29  ;;  %v3372_v29 = vld [vmem:[%s3326_s11 + $0x48] sm:$0xff]  ;;  %v3428_v3 = vld [vmem:[%s3326_s11 + $0xb8] sm:$0xff] }
  0xe7   : > { %v507_v7 = vld [vmem:[#allocation6 + $0x318] sm:$0xff] }
  0xe8   : > { %2429 = vmatpush1.bf16.msra.mxu0 %v2428_v44  ;;  %v3409_v44 = vld [vmem:[%s3326_s11 + $0x80] sm:$0xff]  ;;  %v511_v8 = vld [vmem:[#allocation6 + $0x338] sm:$0xff] }
  0xe9   : > { %2345 = vmatpush1.bf16.msra.mxu1 %v2344_v34  ;;  %v446_v34 = vld [vmem:[#allocation6 + $0x130] sm:$0xff]  ;;  %v3444_v23 = vld [vmem:[%s3326_s11 + $0xd8] sm:$0xff] }
  0xea   : > { %2347 = vmatprep.subr.bf16.mxu1 %v2346_v35  ;;  %v451_v35 = vld [vmem:[#allocation6 + $0x158] sm:$0xff]  ;;  %v2364_v45 = vpack.c.bf16 %v446_v34, %v442_v33  ;;  %v2378_v33 = vpack.c.bf16 %v479_v22, %v475_v20  ;;  %v474_v34 = vld [vmem:[#allocation6 + $0x210] sm:$0xff] }
  0xeb   : > { %v2366_v49 = vpack.c.bf16 %v455_v37, %v451_v35  ;;  %v478_v35 = vld [vmem:[#allocation6 + $0x230] sm:$0xff]  ;;  %v483_v37 = vld [vmem:[#allocation6 + $0x258] sm:$0xff] }
  0xec   : > { %623 = vmatmul.mubr.f32.vlgmr.msra.gmra.mrb[0].mxu1 %v3345_v38  ;;  %v519_v20 = vld [vmem:[#allocation6 + $0x378] sm:$0xff] }
  0xed   : > { %2349 = vmatpush1.bf16.msra.mxu1 %v2348_v48  ;;  %628 = vmatprep.mubr.f32.mxu1 %v3348_v42  ;;  %v1510_v48 = vld [vmem:[#allocation9 + $0xb0] sm:$0xff] }
  0xee   : > { %2351 = vmatprep.subr.bf16.mxu1 %v2350_v53  ;;  %v2430_v53 = vpack.c.bf16 %v1511_v40, %v1509_v39  ;;  %v2432_v58 = vpack.c.bf16 %v1510_v48, %v1508_v47  ;;  %v487_v39 = vld [vmem:[#allocation6 + $0x278] sm:$0xff]  ;;  %v2444_v40 = vpack.c.bf16 %v1522_v31, %v1520_v30 }
  0xef   : > { %v3412_v47 = vld [vmem:[%s3326_s11 + $0x98] sm:$0xff]  ;;  %v2382_v48 = vpack.c.bf16 %v487_v39, %v483_v37  ;;  %v522_v37 = vld [vmem:[#allocation6 + $0x390] sm:$0xff] }
  0xf0   : > { %629 = vmatmul.mubr.f32.gmra.mrb[2].mxu1 %v3352_v62  ;;  %2431 = vmatprep.subr.bf16.mxu0 %v2430_v53  ;;  %v3417_v53 = vld [vmem:[%s3326_s11 + $0x90] sm:$0xff]  ;;  %v523_v30 = vld [vmem:[#allocation6 + $0x398] sm:$0xff] }
  0xf1   : > { %2353 = vmatpush1.bf16.msra.mxu1 %v2352_v0  ;;  %634 = vmatprep.mubr.f32.mxu1 %v3356_v1  ;;  %v2370_v0 = vpack.c.bf16 %v463_v54, %v459_v52  ;;  %v495_v52 = vld [vmem:[#allocation6 + $0x2b8] sm:$0xff]  ;;  %v526_v39 = vld [vmem:[#allocation6 + $0x3b0] sm:$0xff] }
  0xf2   : > { %2355 = vmatprep.subr.bf16.mxu1 %v2354_v4  ;;  %v467_v4 = vld [vmem:[#allocation6 + $0x1d8] sm:$0xff]  ;;  %2433 = vmatpush1.bf16.msra.mxu0 %v2432_v58  ;;  %v2386_v56 = vpack.c.bf16 %v495_v52, %v491_v51  ;;  %v490_v58 = vld [vmem:[#allocation6 + $0x290] sm:$0xff] }
  0xf3   : > { %v2374_v17 = vpack.c.bf16 %v471_v6, %v467_v4  ;;  %2435 = vmatprep.subr.bf16.mxu0 %v2434_v5  ;;  %v2390_v4 = vpack.c.bf16 %v503_v63, %v499_v61  ;;  %v498_v5 = vld [vmem:[#allocation6 + $0x2d0] sm:$0xff]  ;;  %v527_v31 = vld [vmem:[#allocation6 + $0x3b8] sm:$0xff] }
  0xf4   : > { %635 = vmatmul.mubr.f32.gmra.mrb[4].mxu1 %v3360_v12  ;;  %v502_v6 = vld [vmem:[#allocation6 + $0x2f0] sm:$0xff]  ;;  %v1535_v63 = vld [vmem:[#allocation9 + $0x178] sm:$0xff] }
  0xf5   : > { %2357 = vmatpush1.bf16.msra.mxu1 %v2356_v14  ;;  %640 = vmatprep.mubr.f32.mxu1 %v3364_v15  ;;  %v1516_v14 = vld [vmem:[#allocation9 + $0xe0] sm:$0xff]  ;;  %v530_v52 = vld [vmem:[#allocation6 + $0x3d0] sm:$0xff] }
  0xf6   : > { %2359 = vmatprep.subr.bf16.mxu1 %v2358_v18  ;;  %v466_v18 = vld [vmem:[#allocation6 + $0x1d0] sm:$0xff]  ;;  %2437 = vmatpush1.bf16.msra.mxu0 %v2436_v10  ;;  %v2440_v25 = vpack.c.bf16 %v1518_v16, %v1516_v14  ;;  %v3436_v14 = vld [vmem:[%s3326_s11 + $0xc8] sm:$0xff]  ;;  %v2394_v16 = vpack.c.bf16 %v511_v8, %v507_v7 }
  0xf7   : > { %2439 = vmatprep.subr.bf16.mxu0 %v2438_v21  ;;  %v3433_v10 = vld [vmem:[%s3326_s11 + $0xb0] sm:$0xff]  ;;  %v3441_v21 = vld [vmem:[%s3326_s11 + $0xc0] sm:$0xff] }
  0xf8   : > { %641 = vmatmul.mubr.f32.gmra.mrb[6].mxu1 %v3368_v26  ;;  %v1526_v61 = vld [vmem:[#allocation9 + $0x130] sm:$0xff]  ;;  %v1536_v7 = vld [vmem:[#allocation9 + $0x180] sm:$0xff] }
  0xf9   : > { %2361 = vmatpush1.bf16.msra.mxu1 %v2360_v28  ;;  %646 = vmatprep.mubr.f32.mxu1 %v3372_v29  ;;  %v2376_v28 = vpack.c.bf16 %v470_v19, %v466_v18  ;;  %v510_v18 = vld [vmem:[#allocation6 + $0x330] sm:$0xff]  ;;  %v515_v19 = vld [vmem:[#allocation6 + $0x358] sm:$0xff] }
  0xfa   : > { %2363 = vmatprep.subr.bf16.mxu1 %v2362_v32  ;;  %v3404_v32 = vld [vmem:[%s3326_s11 + $0x88] sm:$0xff]  ;;  %2441 = vmatpush1.bf16.msra.mxu0 %v2440_v25  ;;  %v2398_v24 = vpack.c.bf16 %v519_v20, %v515_v19  ;;  %v514_v25 = vld [vmem:[#allocation6 + $0x350] sm:$0xff]  ;;  %v1547_v20 = vld [vmem:[#allocation9 + $0x1d8] sm:$0xff] }
  0xfb   : > { %2443 = vmatprep.subr.bf16.mxu0 %v2442_v36  ;;  %v2402_v36 = vpack.c.bf16 %v527_v31, %v523_v30  ;;  %v1538_v8 = vld [vmem:[#allocation9 + $0x190] sm:$0xff]  ;;  %v1545_v19 = vld [vmem:[#allocation9 + $0x1c8] sm:$0xff]  ;;  %v1548_v30 = vld [vmem:[#allocation9 + $0x1e0] sm:$0xff] }
  0xfc   : > { %647 = vmatmul.mubr.f32.gmra.mrb[8].mxu1 %v3376_v43  ;;  %v1550_v31 = vld [vmem:[#allocation9 + $0x1f0] sm:$0xff] }
  0xfd   : > { %2365 = vmatpush1.bf16.msra.mxu1 %v2364_v45  ;;  %652 = vmatprep.mubr.f32.mxu1 %v3380_v46  ;;  %v2380_v45 = vpack.c.bf16 %v478_v35, %v474_v34  ;;  %v3452_v35 = vld [vmem:[%s3326_s11 + $0xe8] sm:$0xff] }
  0xfe   : > { %2367 = vmatprep.subr.bf16.mxu1 %v2366_v49  ;;  %v482_v49 = vld [vmem:[#allocation6 + $0x250] sm:$0xff]  ;;  %2445 = vmatpush1.bf16.msra.mxu0 %v2444_v40  ;;  %v531_v40 = vld [vmem:[#allocation6 + $0x3d8] sm:$0xff] }
  0xff   : > { %v2384_v54 = vpack.c.bf16 %v486_v50, %v482_v49  ;;  %v2404_v49 = vpack.c.bf16 %v526_v39, %v522_v37  ;;  %v3460_v50 = vld [vmem:[%s3326_s11 + $0xf8] sm:$0xff]  ;;  %v3506_v37 = vld [vmem:[#allocation9 + $0x200] sm:$0xff] }
 0x100   : > { %653 = vmatmul.mubr.f32.gmra.mrb[10].mxu1 %v3384_v57  ;;  %v3512_v39 = vld [vmem:[#allocation9 + $0x238] sm:$0xff] }
 0x101   : > { %2369 = vmatpush1.bf16.msra.mxu1 %v2368_v59  ;;  %658 = vmatprep.mubr.f32.mxu1 %v3388_v60  ;;  %v494_v59 = vld [vmem:[#allocation6 + $0x2b0] sm:$0xff] }
 0x102   : > { %2371 = vmatprep.subr.bf16.mxu1 %v2370_v0  ;;  %v3425_v0 = vld [vmem:[%s3326_s11 + $0xa0] sm:$0xff]  ;;  %v2388_v2 = vpack.c.bf16 %v494_v59, %v490_v58 }
 0x104   : > { %659 = vmatmul.mubr.f32.gmra.mrb[12].mxu1 %v3392_v9 }
 0x105   : > { %2373 = vmatpush1.bf16.msra.mxu1 %v2372_v11  ;;  %664 = vmatprep.mubr.f32.mxu1 %v3396_v13  ;;  %v2392_v11 = vpack.c.bf16 %v502_v6, %v498_v5  ;;  %v1537_v5 = vld [vmem:[#allocation9 + $0x188] sm:$0xff]  ;;  %v1539_v6 = vld [vmem:[#allocation9 + $0x198] sm:$0xff] }
 0x106   : > { %2375 = vmatprep.subr.bf16.mxu1 %v2374_v17  ;;  %v506_v17 = vld [vmem:[#allocation6 + $0x310] sm:$0xff] }
 0x107   : > { %v2396_v22 = vpack.c.bf16 %v510_v18, %v506_v17  ;;  %v1540_v17 = vld [vmem:[#allocation9 + $0x1a0] sm:$0xff]  ;;  %v1542_v18 = vld [vmem:[#allocation9 + $0x1b0] sm:$0xff] }
 0x108   : > { %665 = vmatmul.mubr.f32.gmra.mrb[14].mxu1 %v3401_v27 }
 0x109   : > { %2377 = vmatpush1.bf16.msra.mxu1 %v2376_v28  ;;  %670 = vmatprep.mubr.f32.mxu1 %v3404_v32  ;;  %v518_v28 = vld [vmem:[#allocation6 + $0x370] sm:$0xff] }
 0x10a   : > { %2379 = vmatprep.subr.bf16.mxu1 %v2378_v33  ;;  %v3449_v33 = vld [vmem:[%s3326_s11 + $0xd0] sm:$0xff]  ;;  %v2400_v34 = vpack.c.bf16 %v518_v28, %v514_v25  ;;  %v1551_v28 = vld [vmem:[#allocation9 + $0x1f8] sm:$0xff] }
 0x10b   : > { %v1549_v25 = vld [vmem:[#allocation9 + $0x1e8] sm:$0xff] }
 0x10c   : > { %671 = vmatmul.mubr.f32.gmra.mrb[16].mxu1 %v3409_v44 }
 0x10d   : > { %2381 = vmatpush1.bf16.msra.mxu1 %v2380_v45  ;;  %676 = vmatprep.mubr.f32.mxu1 %v3412_v47  ;;  %v535_v45 = vld [vmem:[#allocation6 + $0x3f8] sm:$0xff] }
 0x10e   : > { %2383 = vmatprep.subr.bf16.mxu1 %v2382_v48  ;;  %v3457_v48 = vld [vmem:[%s3326_s11 + $0xe0] sm:$0xff]  ;;  %v2406_v51 = vpack.c.bf16 %v535_v45, %v531_v40  ;;  %v3516_v45 = vld [vmem:[#allocation9 + $0x230] sm:$0xff] }
 0x10f   : > { %v3514_v40 = vld [vmem:[#allocation9 + $0x220] sm:$0xff] }
 0x110   : > { %677 = vmatmul.mubr.f32.gmra.mrb[18].mxu1 %v3417_v53 }
 0x111   : > { %2385 = vmatpush1.bf16.msra.mxu1 %v2384_v54  ;;  %682 = vmatprep.mubr.f32.mxu1 %v3420_v55  ;;  %v534_v54 = vld [vmem:[#allocation6 + $0x3f0] sm:$0xff] }
 0x112   : > { %2387 = vmatprep.subr.bf16.mxu1 %v2386_v56  ;;  %v3465_v56 = vld [vmem:[%s3326_s11 + $0xf0] sm:$0xff]  ;;  %v2408_v58 = vpack.c.bf16 %v534_v54, %v530_v52  ;;  %v3528_v54 = vld [vmem:[#allocation9 + $0x278] sm:$0xff] }
 0x113   : > { %v3526_v52 = vld [vmem:[#allocation9 + $0x268] sm:$0xff] }
 0x114   : > { %683 = vmatmul.mubr.f32.gmra.mrb[20].mxu1 %v3425_v0 }
 0x115   : > { %2389 = vmatpush1.bf16.msra.mxu1 %v2388_v2  ;;  %688 = vmatprep.mubr.f32.mxu1 %v3428_v3  ;;  %v1532_v2 = vld [vmem:[#allocation9 + $0x160] sm:$0xff] }
 0x116   : > { %2391 = vmatprep.subr.bf16.mxu1 %v2390_v4  ;;  %v1534_v4 = vld [vmem:[#allocation9 + $0x170] sm:$0xff] }
 0x118   : > { %689 = vmatmul.mubr.f32.gmra.mrb[22].mxu1 %v3433_v10 }
 0x119   : > { %2393 = vmatpush1.bf16.msra.mxu1 %v2392_v11  ;;  %694 = vmatprep.mubr.f32.mxu1 %v3436_v14  ;;  %v1541_v11 = vld [vmem:[#allocation9 + $0x1a8] sm:$0xff] }
 0x11a   : > { %2395 = vmatprep.subr.bf16.mxu1 %v2394_v16  ;;  %v1543_v16 = vld [vmem:[#allocation9 + $0x1b8] sm:$0xff] }
 0x11c   : > { %695 = vmatmul.mubr.f32.gmra.mrb[24].mxu1 %v3441_v21 }
 0x11d   : > { %2397 = vmatpush1.bf16.msra.mxu1 %v2396_v22  ;;  %700 = vmatprep.mubr.f32.mxu1 %v3444_v23  ;;  %v1544_v22 = vld [vmem:[#allocation9 + $0x1c0] sm:$0xff] }
 0x11e   : > { %2399 = vmatprep.subr.bf16.mxu1 %v2398_v24  ;;  %v1546_v24 = vld [vmem:[#allocation9 + $0x1d0] sm:$0xff] }
 0x120   : > { %701 = vmatmul.mubr.f32.gmra.mrb[26].mxu1 %v3449_v33 }
 0x121   : > { %2401 = vmatpush1.bf16.msra.mxu1 %v2400_v34  ;;  %706 = vmatprep.mubr.f32.mxu1 %v3452_v35  ;;  %v1553_v34 = vld [vmem:[#allocation9 + $0x208] sm:$0xff] }
 0x122   : > { %2403 = vmatprep.subr.bf16.mxu1 %v2402_v36  ;;  %v1555_v36 = vld [vmem:[#allocation9 + $0x218] sm:$0xff] }
 0x124   : > { %707 = vmatmul.mubr.f32.gmra.mrb[28].mxu1 %v3457_v48 }
 0x125   : > { %2405 = vmatpush1.bf16.msra.mxu1 %v2404_v49  ;;  %712 = vmatprep.mubr.f32.mxu1 %v3460_v50  ;;  %v3520_v49 = vld [vmem:[#allocation9 + $0x258] sm:$0xff] }
 0x126   : > { %2407 = vmatprep.subr.bf16.mxu1 %v2406_v51  ;;  %v3524_v51 = vld [vmem:[#allocation9 + $0x250] sm:$0xff] }
 0x128   : > { %713 = vmatmul.mubr.f32.gmra.mrb[30].mxu1 %v3465_v56 }
 0x129   : > { %2409 = vmatpush1.bf16.msra.mxu1 %v2408_v58  ;;  %783 = vmatprep.mubr.f32.mxu1 %v3341_v41  ;;  %v1525_v41 = vld [vmem:[#allocation9 + $0x128] sm:$0xff]  ;;  %v3532_v58 = vld [vmem:[#allocation9 + $0x270] sm:$0xff] }
 0x12c   : > { %784 = vmatmul.mubr.f32.vlgmr.msra.gmra.mrb[32].mxu1 %v3345_v38  ;;  %v1527_v38 = vld [vmem:[#allocation9 + $0x138] sm:$0xff] }
 0x12d   : > { %789 = vmatprep.mubr.f32.mxu1 %v3348_v42  ;;  %v2446_v59 = vpack.c.bf16 %v1527_v38, %v1525_v41  ;;  %v1524_v42 = vld [vmem:[#allocation9 + $0x120] sm:$0xff]  ;;  %v3534_v41 = vld [vmem:[#allocation9 + $0x288] sm:$0xff]  ;;  %v3536_v38 = vld [vmem:[#allocation9 + $0x298] sm:$0xff] }
 0x12f   : > { %2447 = vmatprep.subr.bf16.mxu0 %v2446_v59 }
 0x130   : > { %790 = vmatmul.mubr.f32.gmra.mrb[34].mxu1 %v3352_v62  ;;  %v2448_v62 = vpack.c.bf16 %v1526_v61, %v1524_v42  ;;  %v3543_v42 = vld [vmem:[#allocation9 + $0x280] sm:$0xff]  ;;  %v3545_v61 = vld [vmem:[#allocation9 + $0x290] sm:$0xff] }
 0x131   : > { %795 = vmatprep.mubr.f32.mxu1 %v3356_v1  ;;  %v1529_v1 = vld [vmem:[#allocation9 + $0x148] sm:$0xff] }
 0x132   : > { %2449 = vmatpush1.bf16.msra.mxu0 %v2448_v62  ;;  %v3547_v62 = vld [vmem:[#allocation9 + $0x2a8] sm:$0xff] }
 0x134   : > { %796 = vmatmul.mubr.f32.gmra.mrb[36].mxu1 %v3360_v12  ;;  %v1531_v12 = vld [vmem:[#allocation9 + $0x158] sm:$0xff] }
 0x135   : > { %801 = vmatprep.mubr.f32.mxu1 %v3364_v15  ;;  %v2450_v15 = vpack.c.bf16 %v1531_v12, %v1529_v1  ;;  %v3549_v1 = vld [vmem:[#allocation9 + $0x2b8] sm:$0xff] }
 0x137   : > { %2451 = vmatprep.subr.bf16.mxu0 %v2450_v15  ;;  %v3556_v15 = vld [vmem:[#allocation9 + $0x2a0] sm:$0xff] }
 0x138   : > { %802 = vmatmul.mubr.f32.gmra.mrb[38].mxu1 %v3368_v26  ;;  %v1528_v26 = vld [vmem:[#allocation9 + $0x140] sm:$0xff] }
 0x139   : > { %807 = vmatprep.mubr.f32.mxu1 %v3372_v29  ;;  %v1530_v29 = vld [vmem:[#allocation9 + $0x150] sm:$0xff] }
 0x13c   : > { %808 = vmatmul.mubr.f32.gmra.mrb[40].mxu1 %v3376_v43  ;;  %v2452_v43 = vpack.c.bf16 %v1530_v29, %v1528_v26  ;;  %v3558_v26 = vld [vmem:[#allocation9 + $0x2b0] sm:$0xff]  ;;  %v3560_v29 = vld [vmem:[#allocation9 + $0x2c8] sm:$0xff] }
 0x13d   : > { %813 = vmatprep.mubr.f32.mxu1 %v3380_v46  ;;  %v1533_v46 = vld [vmem:[#allocation9 + $0x168] sm:$0xff] }
 0x13e   : > { %2453 = vmatpush1.bf16.msra.mxu0 %v2452_v43 }
 0x140   : > { %814 = vmatmul.mubr.f32.gmra.mrb[42].mxu1 %v3384_v57  ;;  %v2454_v57 = vpack.c.bf16 %v1535_v63, %v1533_v46  ;;  %v3566_v63 = vld [vmem:[#allocation9 + $0x2d8] sm:$0xff] }
 0x141   : > { %819 = vmatprep.mubr.f32.mxu1 %v3388_v60  ;;  %v2456_v60 = vpack.c.bf16 %v1534_v4, %v1532_v2  ;;  %v3570_v2 = vld [vmem:[#allocation9 + $0x2d0] sm:$0xff] }
 0x142   : > { %2455 = vmatprep.subr.bf16.mxu0 %v2454_v57  ;;  %v3568_v57 = vld [vmem:[#allocation9 + $0x2c0] sm:$0xff] }
 0x143   : > { %2457 = vmatpush1.bf16.msra.mxu0 %v2456_v60  ;;  %4677 = vst [vmem:[#allocation19_spill] sm:$0xff] %v3568_v57  ;;  %v3664_v60 = vld [vmem:[#allocation9 + $0x360] sm:$0xff] }
 0x144   : > { %820 = vmatmul.mubr.f32.gmra.mrb[44].mxu1 %v3392_v9  ;;  %v2458_v9 = vpack.c.bf16 %v1539_v6, %v1537_v5  ;;  %v3653_v6 = vld [vmem:[#allocation9 + $0x378] sm:$0xff]  ;;  %4698 = vst [vmem:[#allocation40_spill] sm:$0xff] %v3664_v60  ;;  %v3710_v60 = vld [vmem:[#allocation9 + $0x3a0] sm:$0xff] }
 0x145   : > { %825 = vmatprep.mubr.f32.mxu1 %v3396_v13  ;;  %v2460_v13 = vpack.c.bf16 %v1538_v8, %v1536_v7  ;;  %v3580_v7 = vld [vmem:[#allocation9 + $0x2e8] sm:$0xff]  ;;  %v3582_v8 = vld [vmem:[#allocation9 + $0x2f8] sm:$0xff]  ;;  %4696 = vst [vmem:[#allocation38_spill] sm:$0xff] %v3653_v6  ;;  %4706 = vst [vmem:[#allocation48_spill] sm:$0xff] %v3710_v60 }
 0x146   : > { %2459 = vmatprep.subr.bf16.mxu0 %v2458_v9  ;;  %4678 = vst [vmem:[#allocation20_spill] sm:$0xff] %v3580_v7  ;;  %4679 = vst [vmem:[#allocation21_spill] sm:$0xff] %v3582_v8  ;;  %v3649_v9 = vld [vmem:[#allocation9 + $0x350] sm:$0xff] }
 0x147   : > { %2461 = vmatpush1.bf16.msra.mxu0 %v2460_v13  ;;  %v3584_v13 = vld [vmem:[#allocation9 + $0x2e0] sm:$0xff]  ;;  %4694 = vst [vmem:[#allocation36_spill] sm:$0xff] %v3649_v9 }
 0x148   : > { %826 = vmatmul.mubr.f32.gmra.mrb[46].mxu1 %v3401_v27  ;;  %v2462_v27 = vpack.c.bf16 %v1543_v16, %v1541_v11  ;;  %4680 = vst [vmem:[#allocation22_spill] sm:$0xff] %v3584_v13 }
 0x149   : > { %831 = vmatprep.mubr.f32.mxu1 %v3404_v32  ;;  %v2464_v32 = vpack.c.bf16 %v1542_v18, %v1540_v17  ;;  %v3593_v18 = vld [vmem:[#allocation9 + $0x2f0] sm:$0xff] }
 0x14a   : > { %2463 = vmatprep.subr.bf16.mxu0 %v2462_v27  ;;  %4681 = vst [vmem:[#allocation23_spill] sm:$0xff] %v3593_v18 }
 0x14b   : > { %2465 = vmatpush1.bf16.msra.mxu0 %v2464_v32  ;;  %v3595_v32 = vld [vmem:[#allocation9 + $0x308] sm:$0xff] }
 0x14c   : > { %832 = vmatmul.mubr.f32.gmra.mrb[48].mxu1 %v3409_v44  ;;  %v2466_v44 = vpack.c.bf16 %v1547_v20, %v1545_v19  ;;  %4682 = vst [vmem:[#allocation24_spill] sm:$0xff] %v3595_v32  ;;  %v3597_v19 = vld [vmem:[#allocation9 + $0x318] sm:$0xff] }
 0x14d   : > { %837 = vmatprep.mubr.f32.mxu1 %v3412_v47  ;;  %v2468_v47 = vpack.c.bf16 %v1546_v24, %v1544_v22  ;;  %4683 = vst [vmem:[#allocation25_spill] sm:$0xff] %v3597_v19  ;;  %v3638_v24 = vld [vmem:[#allocation9 + $0x340] sm:$0xff] }
 0x14e   : > { %2467 = vmatprep.subr.bf16.mxu0 %v2466_v44  ;;  %4692 = vst [vmem:[#allocation34_spill] sm:$0xff] %v3638_v24 }
 0x14f   : > { %2469 = vmatpush1.bf16.msra.mxu0 %v2468_v47  ;;  %v3607_v47 = vld [vmem:[#allocation9 + $0x300] sm:$0xff] }
 0x150   : > { %838 = vmatmul.mubr.f32.gmra.mrb[50].mxu1 %v3417_v53  ;;  %v2470_v53 = vpack.c.bf16 %v1551_v28, %v1549_v25  ;;  %4684 = vst [vmem:[#allocation26_spill] sm:$0xff] %v3607_v47  ;;  %v3609_v25 = vld [vmem:[#allocation9 + $0x310] sm:$0xff] }
 0x151   : > { %843 = vmatprep.mubr.f32.mxu1 %v3420_v55  ;;  %v2472_v55 = vpack.c.bf16 %v1550_v31, %v1548_v30  ;;  %4685 = vst [vmem:[#allocation27_spill] sm:$0xff] %v3609_v25  ;;  %v3634_v31 = vld [vmem:[#allocation9 + $0x348] sm:$0xff] }
 0x152   : > { %2471 = vmatprep.subr.bf16.mxu0 %v2470_v53  ;;  %v3612_v53 = vld [vmem:[#allocation9 + $0x328] sm:$0xff]  ;;  %4690 = vst [vmem:[#allocation32_spill] sm:$0xff] %v3634_v31 }
 0x153   : > { %2473 = vmatpush1.bf16.msra.mxu0 %v2472_v55  ;;  %4686 = vst [vmem:[#allocation28_spill] sm:$0xff] %v3612_v53  ;;  %v3651_v55 = vld [vmem:[#allocation9 + $0x368] sm:$0xff]  ;;  %v3697_v53 = vld [vmem:[#allocation9 + $0x3b8] sm:$0xff] }
 0x154   : > { %844 = vmatmul.mubr.f32.gmra.mrb[52].mxu1 %v3425_v0  ;;  %v2474_v0 = vpack.c.bf16 %v1555_v36, %v1553_v34  ;;  %v3621_v36 = vld [vmem:[#allocation9 + $0x338] sm:$0xff]  ;;  %4695 = vst [vmem:[#allocation37_spill] sm:$0xff] %v3651_v55  ;;  %4705 = vst [vmem:[#allocation47_spill] sm:$0xff] %v3697_v53 }
 0x155   : > { %849 = vmatprep.mubr.f32.mxu1 %v3428_v3  ;;  %v538_v3 = vlaneseq  ;;  %4687 = vst [vmem:[#allocation29_spill] sm:$0xff] %v3621_v36  ;;  %v3636_v34 = vld [vmem:[#allocation9 + $0x358] sm:$0xff]  ;;  %v3684_v36 = vld [vmem:[#allocation9 + $0x380] sm:$0xff] }
 0x156   : > { %2475 = vmatprep.subr.bf16.mxu0 %v2474_v0  ;;  %v3623_v0 = vld [vmem:[#allocation9 + $0x320] sm:$0xff]  ;;  %4691 = vst [vmem:[#allocation33_spill] sm:$0xff] %v3636_v34  ;;  %4702 = vst [vmem:[#allocation44_spill] sm:$0xff] %v3684_v36  ;;  %v3723_v36 = vld [vmem:[#allocation9 + $0x3c8] sm:$0xff] }
 0x157   : > { %4688 = vst [vmem:[#allocation30_spill] sm:$0xff] %v3623_v0  ;;  %4708 = vst [vmem:[#allocation50_spill] sm:$0xff] %v3723_v36 }
 0x158   : > { %850 = vmatmul.mubr.f32.gmra.mrb[54].mxu1 %v3433_v10  ;;  %v3500_v10 = vshrl.u32 %v538_v3, 7  ;;  %v3625_v3 = vld [vmem:[#allocation9 + $0x330] sm:$0xff] }
 0x159   : > { %855 = vmatprep.mubr.f32.mxu1 %v3436_v14  ;;  %v3502_v14 = vld [vmem:[#allocation8] sm:$0xf]  ;;  %4689 = vst [vmem:[#allocation31_spill] sm:$0xff] %v3625_v3  ;;  %v3695_v3 = vld [vmem:[#allocation9 + $0x3a8] sm:$0xff] }
 0x15a   : > { %4676 = vst [vmem:[#allocation18_spill] sm:$0xff] %v3500_v10  ;;  %v548_v20 = vsub.s32 2, %v3500_v10  ;;  %v552_v28 = vsub.s32 3, %v3500_v10  ;;  %4704 = vst [vmem:[#allocation46_spill] sm:$0xff] %v3695_v3 }
 0x15c   : > { %856 = vmatmul.mubr.f32.gmra.mrb[56].mxu1 %v3441_v21  ;;  %v4624_v21 = vsub.s32 0, %v3500_v10 }
 0x15d   : > { %861 = vmatprep.mubr.f32.mxu1 %v3444_v23  ;;  %v4623_v23 = vsub.s32 1, %v3500_v10  ;;  %v3674_v10 = vld [vmem:[#allocation9 + $0x388] sm:$0xff] }
 0x15e   : > { %v3541_v59 = vrot.slane %v3502_v14, %v4624_v21  ;;  %v3647_v21 = vrot.slane %v3502_v14, %v548_v20  ;;  %v3666_v20 = vld [vmem:[#allocation9 + $0x370] sm:$0xff]  ;;  %4700 = vst [vmem:[#allocation42_spill] sm:$0xff] %v3674_v10 }
 0x15f   : > { %v3554_v12 = vrot.slane %v3502_v14, %v4623_v23  ;;  %4699 = vst [vmem:[#allocation41_spill] sm:$0xff] %v3666_v20 }
 0x160   : > { %862 = vmatmul.mubr.f32.gmra.mrb[58].mxu1 %v3449_v33  ;;  %v3508_v33 = vld [vmem:[#allocation9 + $0x210] sm:$0xff]  ;;  %4693 = vst [vmem:[#allocation35_spill] sm:$0xff] %v3647_v21 }
 0x161   : > { %867 = vmatprep.mubr.f32.mxu1 %v3452_v35  ;;  %v3510_v35 = vld [vmem:[#allocation9 + $0x228] sm:$0xff] }
 0x164   : > { %868 = vmatmul.mubr.f32.gmra.mrb[60].mxu1 %v3457_v48  ;;  %v3518_v48 = vld [vmem:[#allocation9 + $0x248] sm:$0xff] }
 0x165   : > { %873 = vmatprep.mubr.f32.mxu1 %v3460_v50  ;;  %v3522_v50 = vld [vmem:[#allocation9 + $0x240] sm:$0xff] }
 0x168   : > { %874 = vmatmul.mubr.f32.gmra.mrb[62].mxu1 %v3465_v56  ;;  %v3530_v56 = vld [vmem:[#allocation9 + $0x260] sm:$0xff] }
 0x1bf   : > { %v624_v4 = vpop.f32.mrb[0].mxu1 }
 0x1c0   : > { %v3587_v11 = vadd.f32 %v624_v4, %v3541_v59  ;;  %v626_v16 = vpop.f32.mrb[1].mxu1 }
 0x1c1   : > { %v3601_v44 = vadd.f32 %v626_v16, %v3554_v12 }
 0x1c2   : > { %v944_v30 = vmul.f32 0.044715, %v3587_v11 }
 0x1c3   : > { %v630_v4 = vpop.f32.mrb[2].mxu1  ;;  %v945_v16 = vmul.f32 0.044715, %v3601_v44 }
 0x1c4   : > { %v1008_v22 = vmul.f32 %v944_v30, %v3587_v11  ;;  %v3642_v17 = vadd.f32 %v630_v4, %v3541_v59  ;;  %v632_v27 = vpop.f32.mrb[3].mxu1  ;;  %v3660_v4 = vrot.slane %v3502_v14, %v552_v28  ;;  %v3676_v14 = vld [vmem:[#allocation9 + $0x398] sm:$0xff] }
 0x1c5   : > { %v3656_v5 = vadd.f32 %v632_v27, %v3554_v12  ;;  %v1009_v30 = vmul.f32 %v945_v16, %v3601_v44  ;;  %4701 = vst [vmem:[#allocation43_spill] sm:$0xff] %v3676_v14  ;;  %v3686_v27 = vld [vmem:[#allocation9 + $0x390] sm:$0xff] }
 0x1c6   : > { %4697 = vst [vmem:[#allocation39_spill] sm:$0xff] %v3660_v4  ;;  %v948_v46 = vmul.f32 0.044715, %v3642_v17  ;;  %v1072_v43 = vmul.f32 %v1008_v22, %v3587_v11  ;;  %4703 = vst [vmem:[#allocation45_spill] sm:$0xff] %v3686_v27  ;;  %v3725_v27 = vld [vmem:[#allocation9 + $0x3d8] sm:$0xff] }
 0x1c7   : > { %v949_v28 = vmul.f32 0.044715, %v3656_v5  ;;  %v636_v23 = vpop.f32.mrb[4].mxu1  ;;  %v1073_v4 = vmul.f32 %v1009_v30, %v3601_v44  ;;  %4709 = vst [vmem:[#allocation51_spill] sm:$0xff] %v3725_v27  ;;  %v885_v32 = vmul.f32 0.5, %v3656_v5 }
 0x1c8   : > { %v1012_v16 = vmul.f32 %v948_v46, %v3642_v17  ;;  %v3690_v31 = vadd.f32 %v636_v23, %v3541_v59  ;;  %v638_v34 = vpop.f32.mrb[5].mxu1  ;;  %v1136_v0 = vadd.f32 %v1072_v43, %v3587_v11  ;;  %v3716_v23 = vld [vmem:[#allocation9 + $0x3b0] sm:$0xff] }
 0x1c9   : > { %v1013_v22 = vmul.f32 %v949_v28, %v3656_v5  ;;  %v3701_v55 = vadd.f32 %v638_v34, %v3554_v12  ;;  %v1137_v46 = vadd.f32 %v1073_v4, %v3601_v44  ;;  %4707 = vst [vmem:[#allocation49_spill] sm:$0xff] %v3716_v23 }
 0x1ca   : > { %v952_v6 = vmul.f32 0.044715, %v3690_v31  ;;  %v1200_v43 = vmul.f32 0.7978846, %v1136_v0  ;;  %v1076_v24 = vmul.f32 %v1012_v16, %v3642_v17 }
 0x1cb   : > { %v953_v28 = vmul.f32 0.044715, %v3701_v55  ;;  %v642_v20 = vpop.f32.mrb[6].mxu1  ;;  %v1201_v34 = vmul.f32 0.7978846, %v1137_v46  ;;  %v1077_v9 = vmul.f32 %v1013_v22, %v3656_v5 }
 0x1cc   : > { %v1016_v0 = vmul.f32 %v952_v6, %v3690_v31  ;;  %v3720_v16 = vadd.f32 %v642_v20, %v3541_v59  ;;  %v644_v10 = vpop.f32.mrb[7].mxu1  ;;  %2679 = vtanh.f32 %v1200_v43  ;;  %v1140_v30 = vadd.f32 %v1076_v24, %v3642_v17 }
 0x1cd   : > { %v1017_v22 = vmul.f32 %v953_v28, %v3701_v55  ;;  %v3729_v46 = vadd.f32 %v644_v10, %v3554_v12  ;;  %2681 = vtanh.f32 %v1201_v34  ;;  %v1141_v4 = vadd.f32 %v1077_v9, %v3656_v5 }
 0x1ce   : > { %v956_v6 = vmul.f32 0.044715, %v3720_v16  ;;  %v1204_v20 = vmul.f32 0.7978846, %v1140_v30  ;;  %v1080_v3 = vmul.f32 %v1016_v0, %v3690_v31  ;;  %v880_v10 = vmul.f32 0.5, %v3587_v11 }
 0x1cf   : > { %v957_v43 = vmul.f32 0.044715, %v3729_v46  ;;  %v648_v53 = vpop.f32.mrb[8].mxu1  ;;  %v1205_v14 = vmul.f32 0.7978846, %v1141_v4  ;;  %v1081_v28 = vmul.f32 %v1017_v22, %v3701_v55 }
 0x1d0   : > { %v1020_v34 = vmul.f32 %v956_v6, %v3720_v16  ;;  %v3742_v9 = vadd.f32 %v648_v53, %v3541_v59  ;;  %v650_v30 = vpop.f32.mrb[9].mxu1  ;;  %2683 = vtanh.f32 %v1204_v20  ;;  %v1144_v0 = vadd.f32 %v1080_v3, %v3690_v31 }
 0x1d1   : > { %v1021_v24 = vmul.f32 %v957_v43, %v3729_v46  ;;  %v3747_v60 = vadd.f32 %v650_v30, %v3554_v12  ;;  %2685 = vtanh.f32 %v1205_v14  ;;  %v1145_v4 = vadd.f32 %v1081_v28, %v3701_v55 }
 0x1d2   : > { %v960_v22 = vmul.f32 0.044715, %v3742_v9  ;;  %v1208_v6 = vmul.f32 0.7978846, %v1144_v0  ;;  %v1084_v53 = vmul.f32 %v1020_v34, %v3720_v16  ;;  %v881_v3 = vmul.f32 0.5, %v3601_v44 }
 0x1d3   : > { %v961_v36 = vmul.f32 0.044715, %v3747_v60  ;;  %v654_v20 = vpop.f32.mrb[10].mxu1  ;;  %v1209_v27 = vmul.f32 0.7978846, %v1145_v4  ;;  %v1085_v43 = vmul.f32 %v1021_v24, %v3729_v46 }
 0x1d4   : > { %v1024_v30 = vmul.f32 %v960_v22, %v3742_v9  ;;  %v3758_v14 = vadd.f32 %v654_v20, %v3541_v59  ;;  %v656_v28 = vpop.f32.mrb[11].mxu1  ;;  %2687 = vtanh.f32 %v1208_v6  ;;  %v1148_v11 = vadd.f32 %v1084_v53, %v3720_v16 }
 0x1d5   : > { %v1025_v0 = vmul.f32 %v961_v36, %v3747_v60  ;;  %v3763_v34 = vadd.f32 %v656_v28, %v3554_v12  ;;  %2689 = vtanh.f32 %v1209_v27  ;;  %v1149_v44 = vadd.f32 %v1085_v43, %v3729_v46 }
 0x1d6   : > { %v2680_v4 = vpop.eup %2679  ;;  %v964_v24 = vmul.f32 0.044715, %v3758_v14  ;;  %v884_v22 = vmul.f32 0.5, %v3642_v17  ;;  %v1212_v23 = vmul.f32 0.7978846, %v1148_v11  ;;  %v1088_v20 = vmul.f32 %v1024_v30, %v3742_v9 }
 0x1d7   : > { %v2682_v21 = vpop.eup %2681  ;;  %v965_v6 = vmul.f32 0.044715, %v3763_v34  ;;  %v660_v53 = vpop.f32.mrb[12].mxu1  ;;  %v1328_v47 = vadd.f32 1.0, %v2680_v4  ;;  %v1213_v36 = vmul.f32 0.7978846, %v1149_v44  ;;  %v1089_v28 = vmul.f32 %v1025_v0, %v3747_v60 }
 0x1d8   : > { %v3772_v27 = vadd.f32 %v660_v53, %v3541_v59  ;;  %v662_v43 = vpop.f32.mrb[13].mxu1  ;;  %v1329_v25 = vadd.f32 1.0, %v2682_v21  ;;  %2691 = vtanh.f32 %v1212_v23  ;;  %v888_v11 = vmul.f32 0.5, %v3690_v31  ;;  %v3780_v4 = vld [vmem:[#allocation9 + $0x3c0] sm:$0xff]  ;;  %v3782_v44 = vld [vmem:[#allocation9 + $0x3d0] sm:$0xff] }
 0x1d9   : > { %v1029_v17 = vmul.f32 %v965_v6, %v3763_v34  ;;  %v3777_v30 = vadd.f32 %v662_v43, %v3554_v12  ;;  %2693 = vtanh.f32 %v1213_v36  ;;  %v1028_v53 = vmul.f32 %v964_v24, %v3758_v14 }
 0x1da   : > { %v2684_v0 = vpop.eup %2683  ;;  %v1393_v19 = vmul.f32 %v1329_v25, %v881_v3  ;;  %v1153_v21 = vadd.f32 %v1089_v28, %v3747_v60  ;;  %v1152_v5 = vadd.f32 %v1088_v20, %v3742_v9  ;;  %v1392_v13 = vmul.f32 %v1328_v47, %v880_v10 }
 0x1db   : > { %v2686_v23 = vpop.eup %2685  ;;  %v969_v6 = vmul.f32 0.044715, %v3777_v30  ;;  %v666_v43 = vpop.f32.mrb[14].mxu1  ;;  %v1332_v18 = vadd.f32 1.0, %v2684_v0  ;;  %v1093_v31 = vmul.f32 %v1029_v17, %v3763_v34  ;;  %v968_v36 = vmul.f32 0.044715, %v3772_v27 }
 0x1dc   : > { %v668_v7 = vpop.f32.mrb[15].mxu1  ;;  %1680 = vmatprep.mubr.f32.mxu0 %v1393_v19  ;;  %v1333_v8 = vadd.f32 1.0, %v2686_v23  ;;  %v1217_v57 = vmul.f32 0.7978846, %v1153_v21  ;;  %v2532_v25 = vpack.c.bf16 %v3782_v44, %v3780_v4  ;;  %v3794_v24 = vadd.f32 %v666_v43, %v3541_v59  ;;  %v3820_v43 = vld [vmem:[#allocation9 + $0x3f8] sm:$0xff] }
 0x1dd   : > { %v1033_v3 = vmul.f32 %v969_v6, %v3777_v30  ;;  %v3797_v20 = vadd.f32 %v668_v7, %v3554_v12  ;;  %1681 = vmatmul.mubr.f32.vlgmr.msra.gmra.mrb[0].mxu0 %v1392_v13  ;;  %v1216_v47 = vmul.f32 0.7978846, %v1152_v5  ;;  %v4710_v28 = vpack.c.bf16 %v3508_v33, %v3506_v37 }
 0x1de   : > { %v2688_v10 = vpop.eup %2687  ;;  %v1397_v19 = vmul.f32 %v1333_v8, %v885_v32  ;;  %v1396_v17 = vmul.f32 %v1332_v18, %v884_v22  ;;  %2695 = vtanh.f32 %v1217_v57  ;;  %v1157_v0 = vadd.f32 %v1093_v31, %v3763_v34 }
 0x1df   : > { %2477 = vmatpush1.bf16.msra.mxu0 %v4710_v28  ;;  %v2690_v21 = vpop.eup %2689  ;;  %v973_v23 = vmul.f32 0.044715, %v3797_v20  ;;  %v672_v6 = vpop.f32.mrb[16].mxu1  ;;  %v4711_v7 = vpack.c.bf16 %v3512_v39, %v3510_v35  ;;  %v1336_v13 = vadd.f32 1.0, %v2688_v10  ;;  %2697 = vtanh.f32 %v1216_v47 }
 0x1e0   : > { %v1092_v5 = vmul.f32 %v1028_v53, %v3758_v14  ;;  %v3809_v37 = vadd.f32 %v672_v6, %v3541_v59  ;;  %v674_v33 = vpop.f32.mrb[17].mxu1  ;;  %1686 = vmatprep.mubr.f32.mxu0 %v1397_v19  ;;  %v889_v57 = vmul.f32 0.5, %v3701_v55  ;;  %v1337_v8 = vadd.f32 1.0, %v2690_v21  ;;  %v3818_v53 = vld [vmem:[#allocation9 + $0x3e8] sm:$0xff] }
 0x1e1   : > { %2479 = vmatprep.subr.bf16.mxu0 %v4711_v7  ;;  %v1221_v18 = vmul.f32 0.7978846, %v1157_v0  ;;  %v1032_v32 = vmul.f32 %v968_v36, %v3772_v27  ;;  %v3814_v22 = vadd.f32 %v674_v33, %v3554_v12  ;;  %1687 = vmatmul.mubr.f32.gmra.mrb[2].mxu0 %v1396_v17  ;;  %v893_v35 = vmul.f32 0.5, %v3729_v46 }
 0x1e2   : > { %v1156_v39 = vadd.f32 %v1092_v5, %v3758_v14  ;;  %v2692_v31 = vpop.eup %2691  ;;  %v972_v47 = vmul.f32 0.044715, %v3794_v24  ;;  %v1037_v55 = vmul.f32 %v973_v23, %v3797_v20  ;;  %v4712_v36 = vpack.c.bf16 %v3516_v45, %v3514_v40 }
 0x1e3   : > { %v1401_v10 = vmul.f32 %v1337_v8, %v889_v57  ;;  %2699 = vtanh.f32 %v1221_v18  ;;  %v2694_v28 = vpop.eup %2693  ;;  %v678_v19 = vpop.f32.mrb[18].mxu1  ;;  %v1400_v46 = vmul.f32 %v1336_v13, %v888_v11  ;;  %v4713_v17 = vpack.c.bf16 %v3520_v49, %v3518_v48 }
 0x1e4   : > { %2481 = vmatpush1.bf16.msra.mxu0 %v4712_v36  ;;  %v1340_v0 = vadd.f32 1.0, %v2692_v31  ;;  %v1220_v21 = vmul.f32 0.7978846, %v1156_v39  ;;  %v1097_v6 = vmul.f32 %v1033_v3, %v3777_v30  ;;  %v976_v7 = vmul.f32 0.044715, %v3809_v37  ;;  %v680_v5 = vpop.f32.mrb[19].mxu1 }
 0x1e5   : > { %2483 = vmatprep.subr.bf16.mxu0 %v4713_v17  ;;  %v977_v23 = vmul.f32 0.044715, %v3814_v22  ;;  %1692 = vmatprep.mubr.f32.mxu0 %v1401_v10  ;;  %v1341_v40 = vadd.f32 1.0, %v2694_v28  ;;  %v2534_v45 = vpack.c.bf16 %v3820_v43, %v3818_v53  ;;  %v3836_v11 = vadd.f32 %v678_v19, %v3541_v59  ;;  %v3857_v28 = vld [vmem:[#allocation9 + $0x3e0] sm:$0xff] }
 0x1e6   : > { %v3839_v48 = vadd.f32 %v680_v5, %v3554_v12  ;;  %1693 = vmatmul.mubr.f32.gmra.mrb[4].mxu0 %v1400_v46  ;;  %v892_v49 = vmul.f32 0.5, %v3720_v16  ;;  %2701 = vtanh.f32 %v1220_v21  ;;  %v4714_v3 = vpack.c.bf16 %v3524_v51, %v3522_v50  ;;  %v3862_v46 = vld [vmem:[#allocation9 + $0x3f0] sm:$0xff] }
 0x1e7   : > { %v1405_v13 = vmul.f32 %v1341_v40, %v893_v35  ;;  %v896_v33 = vmul.f32 0.5, %v3742_v9  ;;  %v1161_v57 = vadd.f32 %v1097_v6, %v3777_v30  ;;  %v1096_v8 = vmul.f32 %v1032_v32, %v3772_v27  ;;  %v684_v39 = vpop.f32.mrb[20].mxu1 }
 0x1e8   : > { %2485 = vmatpush1.bf16.msra.mxu0 %v4714_v3  ;;  %v1036_v18 = vmul.f32 %v972_v47, %v3794_v24  ;;  %v1404_v31 = vmul.f32 %v1340_v0, %v892_v49  ;;  %v4715_v36 = vpack.c.bf16 %v3528_v54, %v3526_v52  ;;  %v897_v16 = vmul.f32 0.5, %v3747_v60  ;;  %v2696_v51 = vpop.eup %2695  ;;  %v686_v10 = vpop.f32.mrb[21].mxu1 }
 0x1e9   : > { %v1101_v50 = vmul.f32 %v1037_v55, %v3797_v20  ;;  %v1040_v35 = vmul.f32 %v976_v7, %v3809_v37  ;;  %v1041_v9 = vmul.f32 %v977_v23, %v3814_v22  ;;  %1698 = vmatprep.mubr.f32.mxu0 %v1405_v13  ;;  %v1225_v32 = vmul.f32 0.7978846, %v1161_v57  ;;  %v2698_v19 = vpop.eup %2697 }
 0x1ea   : > { %2487 = vmatprep.subr.bf16.mxu0 %v4715_v36  ;;  %v1160_v47 = vadd.f32 %v1096_v8, %v3772_v27  ;;  %v980_v52 = vmul.f32 0.044715, %v3836_v11  ;;  %v981_v54 = vmul.f32 0.044715, %v3839_v48  ;;  %1699 = vmatmul.mubr.f32.gmra.mrb[6].mxu0 %v1404_v31  ;;  %v1345_v60 = vadd.f32 1.0, %v2696_v51 }
 0x1eb   : > { %v1165_v55 = vadd.f32 %v1101_v50, %v3797_v20  ;;  %v3865_v17 = vadd.f32 %v684_v39, %v3541_v59  ;;  %v4716_v0 = vpack.c.bf16 %v3532_v58, %v3530_v56  ;;  %v1344_v21 = vadd.f32 1.0, %v2698_v19  ;;  %v690_v23 = vpop.f32.mrb[22].mxu1 }
 0x1ec   : > { %2703 = vtanh.f32 %v1225_v32  ;;  %v1224_v6 = vmul.f32 0.7978846, %v1160_v47  ;;  %v3871_v7 = vadd.f32 %v686_v10, %v3554_v12  ;;  %v1409_v5 = vmul.f32 %v1345_v60, %v897_v16  ;;  %v692_v57 = vpop.f32.mrb[23].mxu1 }
 0x1ed   : > { %2489 = vmatpush1.bf16.msra.mxu0 %v4716_v0  ;;  %v4717_v40 = vpack.c.bf16 %v3536_v38, %v3534_v41  ;;  %v1229_v49 = vmul.f32 0.7978846, %v1165_v55  ;;  %v1100_v3 = vmul.f32 %v1036_v18, %v3794_v24  ;;  %v2700_v13 = vpop.eup %2699  ;;  %v1408_v8 = vmul.f32 %v1344_v21, %v896_v33 }
 0x1ee   : > { %v900_v56 = vmul.f32 0.5, %v3758_v14  ;;  %2705 = vtanh.f32 %v1224_v6  ;;  %v2536_v58 = vpack.c.bf16 %v3862_v46, %v3857_v28  ;;  %1704 = vmatprep.mubr.f32.mxu0 %v1409_v5  ;;  %v901_v39 = vmul.f32 0.5, %v3763_v34 }
 0x1ef   : > { %2491 = vmatprep.subr.bf16.mxu0 %v4717_v40  ;;  %v1349_v31 = vadd.f32 1.0, %v2700_v13  ;;  %v905_v36 = vmul.f32 0.5, %v3777_v30  ;;  %2707 = vtanh.f32 %v1229_v49  ;;  %v1044_v41 = vmul.f32 %v980_v52, %v3836_v11  ;;  %1705 = vmatmul.mubr.f32.gmra.mrb[8].mxu0 %v1408_v8  ;;  %v696_v30 = vpop.f32.mrb[24].mxu1 }
 0x1f0   : > { %v1045_v38 = vmul.f32 %v981_v54, %v3839_v48  ;;  %v1164_v33 = vadd.f32 %v1100_v3, %v3794_v24  ;;  %v1105_v14 = vmul.f32 %v1041_v9, %v3814_v22  ;;  %v2702_v18 = vpop.eup %2701  ;;  %v984_v16 = vmul.f32 0.044715, %v3865_v17  ;;  %v698_v9 = vpop.f32.mrb[25].mxu1 }
 0x1f1   : > { %v985_v50 = vmul.f32 0.044715, %v3871_v7  ;;  %v4718_v34 = vpack.c.bf16 %v3545_v61, %v3543_v42  ;;  %v1413_v51 = vmul.f32 %v1349_v31, %v901_v39  ;;  %v1104_v10 = vmul.f32 %v1040_v35, %v3809_v37 }
 0x1f2   : > { %v3893_v32 = vadd.f32 %v692_v57, %v3554_v12  ;;  %v3896_v47 = vadd.f32 %v696_v30, %v3541_v59  ;;  %v1348_v19 = vadd.f32 1.0, %v2702_v18  ;;  %v4719_v52 = vpack.c.bf16 %v3549_v1, %v3547_v62 }
 0x1f3   : > { %2493 = vmatpush1.bf16.msra.mxu0 %v4718_v34  ;;  %v1228_v54 = vmul.f32 0.7978846, %v1164_v33  ;;  %v3902_v42 = vadd.f32 %v690_v23, %v3541_v59  ;;  %1710 = vmatprep.mubr.f32.mxu0 %v1413_v51  ;;  %v904_v61 = vmul.f32 0.5, %v3772_v27  ;;  %v1169_v35 = vadd.f32 %v1105_v14, %v3814_v22  ;;  %v702_v27 = vpop.f32.mrb[26].mxu1 }
 0x1f4   : > { %2495 = vmatprep.subr.bf16.mxu0 %v4719_v52  ;;  %v1168_v60 = vadd.f32 %v1104_v10, %v3809_v37  ;;  %v1412_v55 = vmul.f32 %v1348_v19, %v900_v56  ;;  %v909_v0 = vmul.f32 0.5, %v3797_v20  ;;  %v3909_v21 = vmul.f32 0.5, %v3794_v24  ;;  %v704_v20 = vpop.f32.mrb[27].mxu1 }
 0x1f5   : > { %2709 = vtanh.f32 %v1228_v54  ;;  %v1048_v62 = vmul.f32 %v984_v16, %v3865_v17  ;;  %v1049_v1 = vmul.f32 %v985_v50, %v3871_v7  ;;  %v4720_v6 = vpack.c.bf16 %v3558_v26, %v3556_v15 }
 0x1f6   : > { %v1233_v23 = vmul.f32 0.7978846, %v1169_v35  ;;  %v1109_v5 = vmul.f32 %v1045_v38, %v3839_v48  ;;  %v2704_v40 = vpop.eup %2703  ;;  %v989_v49 = vmul.f32 0.044715, %v3893_v32  ;;  %1711 = vmatmul.mubr.f32.gmra.mrb[10].mxu0 %v1412_v55  ;;  %v3919_v24 = vadd.f32 %v702_v27, %v3541_v59 }
 0x1f7   : > { %2497 = vmatpush1.bf16.msra.mxu0 %v4720_v6  ;;  %v4721_v3 = vpack.c.bf16 %v3566_v63, %v3560_v29  ;;  %v1232_v13 = vmul.f32 0.7978846, %v1168_v60  ;;  %v1108_v15 = vmul.f32 %v1044_v41, %v3836_v11  ;;  %v988_v26 = vmul.f32 0.044715, %v3902_v42  ;;  %v4722_v41 = vld [vmem:[#allocation19_spill] sm:$0xff]  ;;  %v708_v18 = vpop.f32.mrb[28].mxu1 }
 0x1f8   : > { %v3927_v57 = vadd.f32 %v704_v20, %v3554_v12  ;;  %v1353_v8 = vadd.f32 1.0, %v2704_v40  ;;  %2711 = vtanh.f32 %v1233_v23  ;;  %v2706_v56 = vpop.eup %2705  ;;  %v3930_v39 = vadd.f32 %v698_v9, %v3554_v12  ;;  %v710_v51 = vpop.f32.mrb[29].mxu1  ;;  %v4724_v9 = vld [vmem:[#allocation21_spill] sm:$0xff]  ;;  %v4728_v20 = vld [vmem:[#allocation22_spill] sm:$0xff] }
 0x1f9   : > { %2499 = vmatprep.subr.bf16.mxu0 %v4721_v3  ;;  %2713 = vtanh.f32 %v1232_v13  ;;  %v1173_v31 = vadd.f32 %v1109_v5, %v3839_v48  ;;  %v1172_v29 = vadd.f32 %v1108_v15, %v3836_v11  ;;  %v2708_v63 = vpop.eup %2707  ;;  %v1352_v33 = vadd.f32 1.0, %v2706_v56  ;;  %v4731_v56 = vld [vmem:[#allocation24_spill] sm:$0xff] }
 0x1fa   : > { %v1417_v38 = vmul.f32 %v1353_v8, %v905_v36  ;;  %v4723_v14 = vpack.c.bf16 %v3570_v2, %v4722_v41  ;;  %v913_v16 = vmul.f32 0.5, %v3814_v22  ;;  %v3939_v50 = vmul.f32 0.5, %v3809_v37  ;;  %v4725_v36 = vld [vmem:[#allocation20_spill] sm:$0xff]  ;;  %v4730_v8 = vld [vmem:[#allocation25_spill] sm:$0xff] }
 0x1fb   : > { %v1053_v34 = vmul.f32 %v989_v49, %v3893_v32  ;;  %v3943_v30 = vadd.f32 %v708_v18, %v3541_v59  ;;  %v1357_v10 = vadd.f32 1.0, %v2708_v63  ;;  %v4726_v19 = vpack.c.bf16 %v4724_v9, %v4725_v36  ;;  %v714_v27 = vpop.f32.mrb[30].mxu1  ;;  %v4727_v49 = vld [vmem:[#allocation23_spill] sm:$0xff] }
 0x1fc   : > { %2501 = vmatpush1.bf16.msra.mxu0 %v4723_v14  ;;  %v1237_v52 = vmul.f32 0.7978846, %v1173_v31  ;;  %v992_v2 = vmul.f32 0.044715, %v3896_v47  ;;  %1716 = vmatprep.mubr.f32.mxu0 %v1417_v38  ;;  %v1416_v54 = vmul.f32 %v1352_v33, %v904_v61  ;;  %v3950_v22 = vadd.f32 %v710_v51, %v3554_v12  ;;  %v716_v3 = vpop.f32.mrb[31].mxu1 }
 0x1fd   : > { %2503 = vmatprep.subr.bf16.mxu0 %v4726_v19  ;;  %v1236_v37 = vmul.f32 0.7978846, %v1172_v29  ;;  %v993_v35 = vmul.f32 0.044715, %v3930_v39  ;;  %v1421_v60 = vmul.f32 %v1357_v10, %v909_v0  ;;  %v1113_v55 = vmul.f32 %v1049_v1, %v3871_v7  ;;  %v4733_v19 = vld [vmem:[#allocation27_spill] sm:$0xff] }
 0x1fe   : > { %2715 = vtanh.f32 %v1237_v52  ;;  %v1052_v6 = vmul.f32 %v988_v26, %v3902_v42  ;;  %1717 = vmatmul.mubr.f32.gmra.mrb[12].mxu0 %v1416_v54  ;;  %v3956_v23 = vmul.f32 0.5, %v3839_v48  ;;  %v1112_v61 = vmul.f32 %v1048_v62, %v3865_v17  ;;  %v4734_v52 = vld [vmem:[#allocation26_spill] sm:$0xff] }
 0x1ff   : > { %2717 = vtanh.f32 %v1236_v37  ;;  %v2710_v5 = vpop.eup %2709  ;;  %v996_v40 = vmul.f32 0.044715, %v3919_v24  ;;  %1722 = vmatprep.mubr.f32.mxu0 %v1421_v60  ;;  %v4729_v0 = vpack.c.bf16 %v4727_v49, %v4728_v20  ;;  %v3964_v1 = vadd.f32 %v714_v27, %v3541_v59  ;;  %v785_v14 = vpop.f32.mrb[32].mxu1  ;;  %v4737_v60 = vld [vmem:[#allocation29_spill] sm:$0xff] }
 0x200   : > { %v3967_v13 = vmul.f32 0.5, %v3836_v11  ;;  %v1177_v48 = vadd.f32 %v1113_v55, %v3871_v7  ;;  %v997_v15 = vmul.f32 0.044715, %v3927_v57  ;;  %v1356_v62 = vadd.f32 1.0, %v2710_v5  ;;  %v4738_v55 = vld [vmem:[#allocation28_spill] sm:$0xff] }
 0x201   : > { %2505 = vmatpush1.bf16.msra.mxu0 %v4729_v0  ;;  %v3972_v26 = vadd.f32 %v716_v3, %v3554_v12  ;;  %v4732_v31 = vpack.c.bf16 %v4730_v8, %v4731_v56  ;;  %v1176_v29 = vadd.f32 %v1112_v61, %v3865_v17  ;;  %v3979_v59 = vmul.f32 %v992_v2, %v3896_v47  ;;  %v4740_v8 = vld [vmem:[#allocation31_spill] sm:$0xff]  ;;  %v4741_v56 = vld [vmem:[#allocation30_spill] sm:$0xff] }
 0x202   : > { %v1057_v11 = vmul.f32 %v993_v35, %v3930_v39  ;;  %v1241_v63 = vmul.f32 0.7978846, %v1177_v48  ;;  %v1117_v38 = vmul.f32 %v1053_v34, %v3893_v32  ;;  %v2712_v33 = vpop.eup %2711  ;;  %v1420_v41 = vmul.f32 %v1356_v62, %v3909_v21  ;;  %v4736_v34 = vld [vmem:[#allocation35_spill] sm:$0xff]  ;;  %v787_v21 = vpop.f32.mrb[33].mxu1 }
 0x203   : > { %2507 = vmatprep.subr.bf16.mxu0 %v4732_v31  ;;  %v3985_v12 = vmul.f32 0.5, %v3871_v7  ;;  %v1240_v18 = vmul.f32 0.7978846, %v1176_v29  ;;  %v1116_v51 = vmul.f32 %v1052_v6, %v3902_v42  ;;  %v2714_v10 = vpop.eup %2713  ;;  %v3989_v9 = vmul.f32 %v996_v40, %v3919_v24  ;;  %v791_v0 = vpop.f32.mrb[34].mxu1 }
 0x204   : > { %v1361_v36 = vadd.f32 1.0, %v2712_v33  ;;  %v4735_v2 = vpack.c.bf16 %v4733_v19, %v4734_v52  ;;  %v3995_v54 = vadd.f32 %v785_v14, %v4736_v34  ;;  %2719 = vtanh.f32 %v1241_v63  ;;  %1723 = vmatmul.mubr.f32.gmra.mrb[14].mxu0 %v1420_v41  ;;  %v793_v29 = vpop.f32.mrb[35].mxu1 }
 0x205   : > { %v1061_v7 = vmul.f32 %v997_v15, %v3927_v57  ;;  %v1000_v37 = vmul.f32 0.044715, %v3943_v30  ;;  %v1360_v35 = vadd.f32 1.0, %v2714_v10  ;;  %v4739_v6 = vpack.c.bf16 %v4737_v60, %v4738_v55 }
 0x206   : > { %2509 = vmatpush1.bf16.msra.mxu0 %v4735_v2  ;;  %2721 = vtanh.f32 %v1240_v18  ;;  %v1001_v27 = vmul.f32 0.044715, %v3950_v22  ;;  %v1425_v61 = vmul.f32 %v1361_v36, %v913_v16  ;;  %v946_v5 = vmul.f32 0.044715, %v3995_v54  ;;  %v4744_v18 = vld [vmem:[#allocation33_spill] sm:$0xff] }
 0x207   : > { %2511 = vmatprep.subr.bf16.mxu0 %v4739_v6  ;;  %v1181_v40 = vadd.f32 %v1117_v38, %v3893_v32  ;;  %v1004_v49 = vmul.f32 0.044715, %v3964_v1  ;;  %v1424_v20 = vmul.f32 %v1360_v35, %v3939_v50  ;;  %v4008_v3 = vmul.f32 0.5, %v3865_v17  ;;  %v4743_v17 = vld [vmem:[#allocation39_spill] sm:$0xff]  ;;  %v797_v35 = vpop.f32.mrb[36].mxu1 }
 0x208   : > { %v1180_v48 = vadd.f32 %v1116_v51, %v3902_v42  ;;  %v2716_v15 = vpop.eup %2715  ;;  %v1005_v62 = vmul.f32 0.044715, %v3972_v26  ;;  %1728 = vmatprep.mubr.f32.mxu0 %v1425_v61  ;;  %v1010_v16 = vmul.f32 %v946_v5, %v3995_v54  ;;  %v4742_v31 = vpack.c.bf16 %v4740_v8, %v4741_v56  ;;  %v4745_v51 = vld [vmem:[#allocation32_spill] sm:$0xff] }
 0x209   : > { %v1245_v63 = vmul.f32 0.7978846, %v1181_v40  ;;  %v1121_v50 = vmul.f32 %v1057_v11, %v3930_v39  ;;  %v2718_v38 = vpop.eup %2717  ;;  %1729 = vmatmul.mubr.f32.gmra.mrb[16].mxu0 %v1424_v20  ;;  %v4018_v33 = vadd.f32 %v787_v21, %v4743_v17  ;;  %v1365_v41 = vadd.f32 1.0, %v2716_v15  ;;  %v4747_v5 = vld [vmem:[#allocation36_spill] sm:$0xff]  ;;  %v4748_v40 = vld [vmem:[#allocation34_spill] sm:$0xff] }
 0x20a   : > { %2513 = vmatpush1.bf16.msra.mxu0 %v4742_v31  ;;  %v4021_v14 = vadd.f32 %v791_v0, %v4736_v34  ;;  %v4746_v10 = vpack.c.bf16 %v4744_v18, %v4745_v51  ;;  %v1244_v36 = vmul.f32 0.7978846, %v1180_v48  ;;  %v1074_v19 = vmul.f32 %v1010_v16, %v3995_v54  ;;  %v799_v0 = vpop.f32.mrb[37].mxu1  ;;  %v4751_v16 = vld [vmem:[#allocation37_spill] sm:$0xff] }
 0x20b   : > { %v1364_v52 = vadd.f32 1.0, %v2718_v38  ;;  %v4028_v2 = vadd.f32 %v793_v29, %v4743_v17  ;;  %2723 = vtanh.f32 %v1245_v63  ;;  %v4031_v11 = vmul.f32 %v1000_v37, %v3943_v30  ;;  %v803_v38 = vpop.f32.mrb[38].mxu1 }
 0x20c   : > { %2515 = vmatprep.subr.bf16.mxu0 %v4746_v10  ;;  %v1429_v21 = vmul.f32 %v1365_v41, %v3956_v23  ;;  %2725 = vtanh.f32 %v1244_v36  ;;  %v1185_v60 = vadd.f32 %v1121_v50, %v3930_v39  ;;  %v1065_v55 = vmul.f32 %v1001_v27, %v3950_v22  ;;  %v4750_v27 = vld [vmem:[#allocation38_spill] sm:$0xff]  ;;  %v4753_v10 = vld [vmem:[#allocation41_spill] sm:$0xff]  ;;  %v4754_v36 = vld [vmem:[#allocation40_spill] sm:$0xff] }
 0x20d   : > { %v1138_v6 = vadd.f32 %v1074_v19, %v3995_v54  ;;  %v1428_v61 = vmul.f32 %v1364_v52, %v3967_v13  ;;  %v4749_v20 = vpack.c.bf16 %v4747_v5, %v4748_v40  ;;  %v925_v37 = vmul.f32 0.5, %v3893_v32  ;;  %v805_v52 = vpop.f32.mrb[39].mxu1 }
 0x20e   : > { %v4043_v48 = vmul.f32 %v1004_v49, %v3964_v1  ;;  %v947_v23 = vmul.f32 0.044715, %v4018_v33  ;;  %1734 = vmatprep.mubr.f32.mxu0 %v1429_v21  ;;  %v924_v15 = vmul.f32 0.5, %v3902_v42  ;;  %v4752_v8 = vpack.c.bf16 %v4750_v27, %v4751_v16  ;;  %v2720_v56 = vpop.eup %2719 }
 0x20f   : > { %2517 = vmatpush1.bf16.msra.mxu0 %v4749_v20  ;;  %v1249_v13 = vmul.f32 0.7978846, %v1185_v60  ;;  %v4051_v31 = vmul.f32 %v1005_v62, %v3972_v26  ;;  %v950_v32 = vmul.f32 0.044715, %v4021_v14  ;;  %v951_v49 = vmul.f32 0.044715, %v4028_v2 }
 0x210   : > { %2519 = vmatprep.subr.bf16.mxu0 %v4752_v8  ;;  %1735 = vmatmul.mubr.f32.gmra.mrb[18].mxu0 %v1428_v61  ;;  %v1120_v29 = vmul.f32 %v3979_v59, %v3896_v47  ;;  %v2722_v63 = vpop.eup %2721  ;;  %v1369_v50 = vadd.f32 1.0, %v2720_v56  ;;  %v4058_v42 = vadd.f32 %v797_v35, %v4736_v34  ;;  %v1125_v41 = vmul.f32 %v1061_v7, %v3927_v57  ;;  %v4756_v60 = vld [vmem:[#allocation43_spill] sm:$0xff]  ;;  %v809_v27 = vpop.f32.mrb[40].mxu1 }
 0x211   : > { %2727 = vtanh.f32 %v1249_v13  ;;  %v4062_v62 = vmul.f32 0.5, %v3995_v54  ;;  %v1202_v18 = vmul.f32 0.7978846, %v1138_v6  ;;  %v1368_v51 = vadd.f32 1.0, %v2722_v63  ;;  %v4757_v6 = vld [vmem:[#allocation42_spill] sm:$0xff] }
 0x212   : > { %v4755_v19 = vpack.c.bf16 %v4753_v10, %v4754_v36  ;;  %v4068_v59 = vmul.f32 0.5, %v3930_v39  ;;  %v4071_v21 = vmul.f32 %v947_v23, %v4018_v33  ;;  %v1433_v35 = vmul.f32 %v1369_v50, %v3985_v12  ;;  %v4763_v10 = vld [vmem:[#allocation46_spill] sm:$0xff] }
 0x213   : > { %v4075_v7 = vadd.f32 %v799_v0, %v4743_v17  ;;  %v1184_v54 = vadd.f32 %v1120_v29, %v3896_v47  ;;  %v4758_v61 = vpack.c.bf16 %v4756_v60, %v4757_v6  ;;  %v4082_v5 = vmul.f32 %v950_v32, %v4021_v14 }
 0x214   : > { %2521 = vmatpush1.bf16.msra.mxu0 %v4755_v19  ;;  %v4085_v39 = vmul.f32 %v951_v49, %v4028_v2  ;;  %v1432_v40 = vmul.f32 %v1368_v51, %v4008_v3  ;;  %v1189_v20 = vadd.f32 %v1125_v41, %v3927_v57  ;;  %1740 = vmatprep.mubr.f32.mxu0 %v1433_v35  ;;  %v954_v12 = vmul.f32 0.044715, %v4058_v42  ;;  %v811_v3 = vpop.f32.mrb[41].mxu1 }
 0x215   : > { %2523 = vmatprep.subr.bf16.mxu0 %v4758_v61  ;;  %v4091_v0 = vadd.f32 %v803_v38, %v4736_v34  ;;  %v1248_v23 = vmul.f32 0.7978846, %v1184_v54  ;;  %v1124_v16 = vmul.f32 %v3989_v9, %v3919_v24  ;;  %v2724_v8 = vpop.eup %2723  ;;  %2729 = vtanh.f32 %v1202_v18  ;;  %v4759_v38 = vld [vmem:[#allocation45_spill] sm:$0xff]  ;;  %v4760_v9 = vld [vmem:[#allocation44_spill] sm:$0xff]  ;;  %v815_v54 = vpop.f32.mrb[42].mxu1 }
 0x216   : > { %1741 = vmatmul.mubr.f32.gmra.mrb[20].mxu0 %v1432_v40  ;;  %v4096_v13 = vmul.f32 0.5, %v3896_v47  ;;  %v1253_v56 = vmul.f32 0.7978846, %v1189_v20  ;;  %v1129_v32 = vmul.f32 %v1065_v55, %v3950_v22  ;;  %v2726_v49 = vpop.eup %2725  ;;  %v955_v29 = vmul.f32 0.044715, %v4075_v7  ;;  %v4762_v55 = vld [vmem:[#allocation47_spill] sm:$0xff] }
 0x217   : > { %v1373_v63 = vadd.f32 1.0, %v2724_v8  ;;  %v4101_v50 = vadd.f32 %v805_v52, %v4743_v17  ;;  %2731 = vtanh.f32 %v1248_v23  ;;  %v4761_v41 = vpack.c.bf16 %v4759_v38, %v4760_v9  ;;  %v817_v20 = vpop.f32.mrb[43].mxu1  ;;  %v4766_v8 = vld [vmem:[#allocation48_spill] sm:$0xff] }
 0x218   : > { %v1372_v18 = vadd.f32 1.0, %v2726_v49  ;;  %v4107_v47 = vmul.f32 0.5, %v3927_v57  ;;  %2733 = vtanh.f32 %v1253_v56  ;;  %v1188_v51 = vadd.f32 %v1124_v16, %v3919_v24 }
 0x219   : > { %2525 = vmatpush1.bf16.msra.mxu0 %v4761_v41  ;;  %v4764_v36 = vpack.c.bf16 %v4762_v55, %v4763_v10  ;;  %v4114_v19 = vmul.f32 %v954_v12, %v4058_v42  ;;  %v1437_v52 = vmul.f32 %v1373_v63, %v925_v37  ;;  %v958_v35 = vmul.f32 0.044715, %v4091_v0  ;;  %v4765_v12 = vld [vmem:[#allocation49_spill] sm:$0xff]  ;;  %v4769_v63 = vld [vmem:[#allocation50_spill] sm:$0xff] }
 0x21a   : > { %v1193_v60 = vadd.f32 %v1129_v32, %v3950_v22  ;;  %v1436_v6 = vmul.f32 %v1372_v18, %v924_v15  ;;  %v4119_v57 = vadd.f32 %v809_v27, %v4736_v34  ;;  %v4122_v61 = vadd.f32 %v811_v3, %v4743_v17 }
 0x21b   : > { %2527 = vmatprep.subr.bf16.mxu0 %v4764_v36  ;;  %v1252_v40 = vmul.f32 0.7978846, %v1188_v51  ;;  %v2728_v23 = vpop.eup %2727  ;;  %v4125_v16 = vmul.f32 %v955_v29, %v4075_v7  ;;  %1746 = vmatprep.mubr.f32.mxu0 %v1437_v52  ;;  %v959_v37 = vmul.f32 0.044715, %v4101_v50  ;;  %v4767_v56 = vpack.c.bf16 %v4765_v12, %v4766_v8  ;;  %v4768_v29 = vld [vmem:[#allocation51_spill] sm:$0xff] }
 0x21c   : > { %v1257_v15 = vmul.f32 0.7978846, %v1193_v60  ;;  %v1128_v27 = vmul.f32 %v4031_v11, %v3943_v30  ;;  %1747 = vmatmul.mubr.f32.gmra.mrb[22].mxu0 %v1436_v6  ;;  %v1377_v3 = vadd.f32 1.0, %v2728_v23  ;;  %v4134_v32 = vmul.f32 0.5, %v3919_v24  ;;  %v821_v11 = vpop.f32.mrb[44].mxu1 }
 0x21d   : > { %2529 = vmatpush1.bf16.msra.mxu0 %v4767_v56  ;;  %2735 = vtanh.f32 %v1252_v40  ;;  %v4137_v49 = vadd.f32 %v815_v54, %v4736_v34  ;;  %v4770_v38 = vpack.c.bf16 %v4768_v29, %v4769_v63  ;;  %v4143_v9 = vmul.f32 0.5, %v3950_v22  ;;  %v823_v36 = vpop.f32.mrb[45].mxu1 }
 0x21e   : > { %2737 = vtanh.f32 %v1257_v15  ;;  %v1192_v41 = vadd.f32 %v1128_v27, %v3943_v30  ;;  %v1133_v18 = vmul.f32 %v4051_v31, %v3972_v26  ;;  %v4149_v24 = vmul.f32 %v958_v35, %v4091_v0 }
 0x21f   : > { %2531 = vmatprep.subr.bf16.mxu0 %v4770_v38  ;;  %v1441_v51 = vmul.f32 %v1377_v3, %v4068_v59  ;;  %v962_v55 = vmul.f32 0.044715, %v4119_v57  ;;  %v963_v10 = vmul.f32 0.044715, %v4122_v61  ;;  %v4155_v22 = vmul.f32 %v959_v37, %v4101_v50  ;;  %v2730_v35 = vpop.eup %2729 }
 0x220   : > { %v4158_v52 = vadd.f32 %v817_v20, %v4743_v17  ;;  %v1256_v54 = vmul.f32 0.7978846, %v1192_v41  ;;  %v1197_v31 = vadd.f32 %v1133_v18, %v3972_v26  ;;  %v966_v59 = vmul.f32 0.044715, %v4137_v49  ;;  %v827_v20 = vpop.f32.mrb[46].mxu1 }
 0x221   : > { %2533 = vmatpush1.bf16.msra.mxu0 %v2532_v25  ;;  %1752 = vmatprep.mubr.f32.mxu0 %v1441_v51  ;;  %v4166_v60 = vmul.f32 0.5, %v3943_v30  ;;  %v1132_v6 = vmul.f32 %v4043_v48, %v3964_v1  ;;  %v1075_v4 = vmul.f32 %v4071_v21, %v4018_v33  ;;  %v2732_v44 = vpop.eup %2731  ;;  %v4176_v25 = vadd.f32 %v821_v11, %v4736_v34 }
 0x222   : > { %2535 = vmatprep.subr.bf16.mxu0 %v2534_v45  ;;  %2739 = vtanh.f32 %v1256_v54  ;;  %v4179_v40 = vadd.f32 %v823_v36, %v4743_v17  ;;  %v1261_v30 = vmul.f32 0.7978846, %v1197_v31  ;;  %v2734_v23 = vpop.eup %2733  ;;  %v1376_v37 = vadd.f32 1.0, %v2732_v44  ;;  %v829_v45 = vpop.f32.mrb[47].mxu1 }
 0x223   : > { %v4182_v48 = vmul.f32 %v962_v55, %v4119_v57  ;;  %v4185_v53 = vmul.f32 %v963_v10, %v4122_v61  ;;  %v1196_v43 = vadd.f32 %v1132_v6, %v3964_v1  ;;  %v1381_v21 = vadd.f32 1.0, %v2734_v23  ;;  %v833_v41 = vpop.f32.mrb[48].mxu1 }
 0x224   : > { %v967_v12 = vmul.f32 0.044715, %v4158_v52  ;;  %v4190_v8 = vmul.f32 0.5, %v3972_v26  ;;  %2741 = vtanh.f32 %v1261_v30  ;;  %v1440_v56 = vmul.f32 %v1376_v37, %v4096_v13  ;;  %v835_v11 = vpop.f32.mrb[49].mxu1 }
 0x225   : > { %2537 = vmatpush1.bf16.msra.mxu0 %v2536_v58  ;;  %v4197_v15 = vmul.f32 %v966_v59, %v4137_v49  ;;  %v1260_v27 = vmul.f32 0.7978846, %v1196_v43  ;;  %v1139_v3 = vadd.f32 %v1075_v4, %v4018_v33  ;;  %v1445_v29 = vmul.f32 %v1381_v21, %v4107_v47  ;;  %v839_v4 = vpop.f32.mrb[50].mxu1 }
 0x226   : > { %v970_v63 = vmul.f32 0.044715, %v4176_v25  ;;  %v971_v26 = vmul.f32 0.044715, %v4179_v40  ;;  %v4204_v38 = vmul.f32 0.5, %v3964_v1  ;;  %1753 = vmatmul.mubr.f32.gmra.mrb[24].mxu0 %v1440_v56  ;;  %v4207_v46 = vadd.f32 %v827_v20, %v4736_v34  ;;  %v841_v20 = vpop.f32.mrb[51].mxu1 }
 0x227   : > { %v2736_v28 = vpop.eup %2735  ;;  %2743 = vtanh.f32 %v1260_v27  ;;  %v4210_v58 = vadd.f32 %v829_v45, %v4743_v17  ;;  %v1203_v13 = vmul.f32 0.7978846, %v1139_v3  ;;  %1758 = vmatprep.mubr.f32.mxu0 %v1445_v29  ;;  %v4213_v51 = vmul.f32 %v967_v12, %v4158_v52  ;;  %v845_v3 = vpop.f32.mrb[52].mxu1 }
 0x228   : > { %v2738_v47 = vpop.eup %2737  ;;  %v1380_v18 = vadd.f32 1.0, %v2736_v28  ;;  %v1330_v1 = vadd.f32 1.0, %v2730_v35  ;;  %v1079_v55 = vmul.f32 %v4085_v39, %v4028_v2  ;;  %v4218_v36 = vmul.f32 0.5, %v4018_v33  ;;  %v847_v28 = vpop.f32.mrb[53].mxu1 }
 0x229   : > { %v1385_v10 = vadd.f32 1.0, %v2738_v47  ;;  %2745 = vtanh.f32 %v1203_v13  ;;  %v4221_v54 = vadd.f32 %v833_v41, %v4736_v34  ;;  %v4225_v59 = vmul.f32 %v970_v63, %v4176_v25 }
 0x22a   : > { %v1444_v31 = vmul.f32 %v1380_v18, %v4134_v32  ;;  %v1143_v6 = vadd.f32 %v1079_v55, %v4028_v2  ;;  %v1078_v35 = vmul.f32 %v4082_v5, %v4021_v14  ;;  %v4232_v33 = vmul.f32 %v971_v26, %v4179_v40 }
 0x22b   : > { %v1449_v39 = vmul.f32 %v1385_v10, %v4143_v9  ;;  %v974_v44 = vmul.f32 0.044715, %v4207_v46  ;;  %v975_v30 = vmul.f32 0.044715, %v4210_v58  ;;  %v4237_v23 = vmul.f32 %v1330_v1, %v4062_v62 }
 0x22c   : > { %v2740_v32 = vpop.eup %2739  ;;  %1759 = vmatmul.mubr.f32.gmra.mrb[26].mxu0 %v1444_v31  ;;  %v4240_v37 = vmul.f32 0.5, %v4028_v2  ;;  %v1207_v5 = vmul.f32 0.7978846, %v1143_v6  ;;  %v1142_v43 = vadd.f32 %v1078_v35, %v4021_v14  ;;  %v978_v45 = vmul.f32 0.044715, %v4221_v54  ;;  %v851_v35 = vpop.f32.mrb[54].mxu1 }
 0x22d   : > { %1764 = vmatprep.mubr.f32.mxu0 %v1449_v39  ;;  %v1384_v9 = vadd.f32 1.0, %v2740_v32  ;;  %v4245_v21 = vadd.f32 %v835_v11, %v4743_v17  ;;  %v1083_v12 = vmul.f32 %v4125_v16, %v4075_v7  ;;  %v4250_v27 = vadd.f32 %v839_v4, %v4736_v34 }
 0x22e   : > { %v2742_v56 = vpop.eup %2741  ;;  %2747 = vtanh.f32 %v1207_v5  ;;  %v1206_v62 = vmul.f32 0.7978846, %v1142_v43  ;;  %v1082_v2 = vmul.f32 %v4114_v19, %v4058_v42  ;;  %v4256_v26 = vadd.f32 %v841_v20, %v4743_v17 }
 0x22f   : > { %v1448_v29 = vmul.f32 %v1384_v9, %v4166_v60  ;;  %v1389_v63 = vadd.f32 1.0, %v2742_v56  ;;  %v1147_v41 = vadd.f32 %v1083_v12, %v4075_v7  ;;  %v4260_v16 = vmul.f32 %v974_v44, %v4207_v46  ;;  %v853_v44 = vpop.f32.mrb[55].mxu1 }
 0x230   : > { %v4263_v13 = vmul.f32 %v975_v30, %v4210_v58  ;;  %2749 = vtanh.f32 %v1206_v62  ;;  %v1146_v11 = vadd.f32 %v1082_v2, %v4058_v42  ;;  %v979_v47 = vmul.f32 0.044715, %v4245_v21  ;;  %v857_v56 = vpop.f32.mrb[56].mxu1 }
 0x231   : > { %v2744_v19 = vpop.eup %2743  ;;  %1765 = vmatmul.mubr.f32.gmra.mrb[28].mxu0 %v1448_v29  ;;  %v1453_v60 = vmul.f32 %v1389_v63, %v4190_v8  ;;  %v886_v18 = vmul.f32 0.5, %v4021_v14  ;;  %v1211_v1 = vmul.f32 0.7978846, %v1147_v41  ;;  %v4270_v10 = vmul.f32 %v978_v45, %v4221_v54  ;;  %v859_v41 = vpop.f32.mrb[57].mxu1 }
 0x232   : > { %v1388_v55 = vadd.f32 1.0, %v2744_v19  ;;  %v1210_v31 = vmul.f32 0.7978846, %v1146_v11  ;;  %v1087_v6 = vmul.f32 %v4155_v22, %v4101_v50  ;;  %v982_v39 = vmul.f32 0.044715, %v4250_v27 }
 0x233   : > { %v2746_v4 = vpop.eup %2745  ;;  %1770 = vmatprep.mubr.f32.mxu0 %v1453_v60  ;;  %v983_v8 = vmul.f32 0.044715, %v4256_v26  ;;  %2751 = vtanh.f32 %v1211_v1  ;;  %v1086_v14 = vmul.f32 %v4149_v24, %v4091_v0  ;;  %v4280_v32 = vadd.f32 %v845_v3, %v4736_v34 }
 0x234   : > { %v1452_v30 = vmul.f32 %v1388_v55, %v4204_v38  ;;  %v1331_v20 = vadd.f32 1.0, %v2746_v4  ;;  %2753 = vtanh.f32 %v1210_v31  ;;  %v4283_v22 = vmul.f32 %v979_v47, %v4245_v21  ;;  %v863_v55 = vpop.f32.mrb[58].mxu1 }
 0x235   : > { %v891_v5 = vmul.f32 0.5, %v4075_v7  ;;  %v1151_v43 = vadd.f32 %v1087_v6, %v4101_v50  ;;  %v1150_v9 = vadd.f32 %v1086_v14, %v4091_v0  ;;  %v890_v45 = vmul.f32 0.5, %v4058_v42 }
 0x236   : > { %1771 = vmatmul.mubr.f32.gmra.mrb[30].mxu0 %v1452_v30  ;;  %v1395_v24 = vmul.f32 %v1331_v20, %v4218_v36  ;;  %v4291_v38 = vadd.f32 %v847_v28, %v4743_v17  ;;  %v1091_v12 = vmul.f32 %v4185_v53, %v4122_v61  ;;  %v4296_v62 = vmul.f32 %v982_v39, %v4250_v27  ;;  %v865_v39 = vpop.f32.mrb[59].mxu1 }
 0x237   : > { %v1215_v7 = vmul.f32 0.7978846, %v1151_v43  ;;  %v1214_v2 = vmul.f32 0.7978846, %v1150_v9  ;;  %v1090_v3 = vmul.f32 %v4182_v48, %v4119_v57  ;;  %v4301_v36 = vmul.f32 %v983_v8, %v4256_v26 }
 0x238   : > { %v2748_v29 = vpop.eup %2747  ;;  %1841 = vmatprep.mubr.f32.mxu0 %v1395_v24  ;;  %v986_v42 = vmul.f32 0.044715, %v4280_v32  ;;  %v4305_v63 = vadd.f32 %v851_v35, %v4736_v34  ;;  %v1155_v53 = vadd.f32 %v1091_v12, %v4122_v61  ;;  %v4309_v11 = vadd.f32 %v853_v44, %v4743_v17  ;;  %v869_v12 = vpop.f32.mrb[60].mxu1 }
 0x239   : > { %v1335_v28 = vadd.f32 1.0, %v2748_v29  ;;  %2755 = vtanh.f32 %v1215_v7  ;;  %v1154_v48 = vadd.f32 %v1090_v3, %v4119_v57  ;;  %v987_v60 = vmul.f32 0.044715, %v4291_v38 }
 0x23a   : > { %v2750_v19 = vpop.eup %2749  ;;  %1842 = vmatmul.mubr.f32.vlgmr.msra.gmra.mrb[0].mxu0 %v4237_v23  ;;  %v895_v47 = vmul.f32 0.5, %v4101_v50  ;;  %2757 = vtanh.f32 %v1214_v2  ;;  %v1219_v1 = vmul.f32 0.7978846, %v1155_v53  ;;  %v4317_v4 = vadd.f32 %v857_v56, %v4736_v34  ;;  %v871_v2 = vpop.f32.mrb[61].mxu1 }
 0x23b   : > { %v1399_v31 = vmul.f32 %v1335_v28, %v4240_v37  ;;  %v1334_v6 = vadd.f32 1.0, %v2750_v19  ;;  %v1218_v35 = vmul.f32 0.7978846, %v1154_v48  ;;  %v4320_v8 = vmul.f32 %v986_v42, %v4280_v32  ;;  %v4353_v19 = vpop.f32.mrb[62].mxu1 }
 0x23c   : > { %v894_v23 = vmul.f32 0.5, %v4091_v0  ;;  %2759 = vtanh.f32 %v1219_v1  ;;  %v1095_v50 = vmul.f32 %v4213_v51, %v4158_v52  ;;  %v990_v37 = vmul.f32 0.044715, %v4305_v63 }
 0x23d   : > { %v2752_v14 = vpop.eup %2751  ;;  %1847 = vmatprep.mubr.f32.mxu0 %v1399_v31  ;;  %v1398_v44 = vmul.f32 %v1334_v6, %v886_v18  ;;  %v991_v30 = vmul.f32 0.044715, %v4309_v11  ;;  %2761 = vtanh.f32 %v1218_v35  ;;  %v4328_v9 = vmul.f32 %v987_v60, %v4291_v38  ;;  %v4363_v6 = vpop.f32.mrb[63].mxu1 }
 0x23e   : > { %v2754_v20 = vpop.eup %2753  ;;  %v1339_v43 = vadd.f32 1.0, %v2752_v14  ;;  %v1159_v24 = vadd.f32 %v1095_v50, %v4158_v52  ;;  %v1094_v0 = vmul.f32 %v4197_v15, %v4137_v49  ;;  %v899_v18 = vmul.f32 0.5, %v4122_v61 }
 0x23f   : > { %1848 = vmatmul.mubr.f32.gmra.mrb[2].mxu0 %v1398_v44  ;;  %v1338_v51 = vadd.f32 1.0, %v2754_v20  ;;  %v898_v56 = vmul.f32 0.5, %v4119_v57  ;;  %v994_v7 = vmul.f32 0.044715, %v4317_v4  ;;  %v4337_v29 = vadd.f32 %v859_v41, %v4743_v17 }
 0x240   : > { %v1403_v3 = vmul.f32 %v1339_v43, %v891_v5  ;;  %v1223_v42 = vmul.f32 0.7978846, %v1159_v24  ;;  %v1158_v53 = vadd.f32 %v1094_v0, %v4137_v49  ;;  %v4341_v15 = vmul.f32 %v990_v37, %v4305_v63 }
 0x241   : > { %v1402_v28 = vmul.f32 %v1338_v51, %v890_v45  ;;  %v4344_v48 = vmul.f32 %v991_v30, %v4309_v11  ;;  %v1099_v57 = vmul.f32 %v4232_v33, %v4179_v40  ;;  %v4349_v5 = vadd.f32 %v863_v55, %v4736_v34 }
 0x242   : > { %1853 = vmatprep.mubr.f32.mxu0 %v1403_v3  ;;  %2763 = vtanh.f32 %v1223_v42  ;;  %v1222_v61 = vmul.f32 0.7978846, %v1158_v53  ;;  %v1098_v41 = vmul.f32 %v4225_v59, %v4176_v25  ;;  %v4356_v60 = vmul.f32 %v994_v7, %v4317_v4 }
 0x243   : > { %v2756_v45 = vpop.eup %2755  ;;  %1854 = vmatmul.mubr.f32.gmra.mrb[4].mxu0 %v1402_v28  ;;  %v903_v1 = vmul.f32 0.5, %v4158_v52  ;;  %v4360_v33 = vadd.f32 %v865_v39, %v4743_v17  ;;  %v1163_v31 = vadd.f32 %v1099_v57, %v4179_v40  ;;  %v995_v59 = vmul.f32 0.044715, %v4337_v29 }
 0x244   : > { %v2758_v55 = vpop.eup %2757  ;;  %v1343_v35 = vadd.f32 1.0, %v2756_v45  ;;  %2765 = vtanh.f32 %v1222_v61  ;;  %v1162_v50 = vadd.f32 %v1098_v41, %v4176_v25  ;;  %v902_v44 = vmul.f32 0.5, %v4137_v49 }
 0x245   : > { %v1342_v14 = vadd.f32 1.0, %v2758_v55  ;;  %v1227_v37 = vmul.f32 0.7978846, %v1163_v31  ;;  %v1103_v52 = vmul.f32 %v4263_v13, %v4210_v58  ;;  %v998_v20 = vmul.f32 0.044715, %v4349_v5 }
 0x246   : > { %v2760_v39 = vpop.eup %2759  ;;  %v1407_v30 = vmul.f32 %v1343_v35, %v895_v47  ;;  %v1226_v43 = vmul.f32 0.7978846, %v1162_v50  ;;  %v4372_v24 = vadd.f32 %v869_v12, %v4736_v34  ;;  %v999_v3 = vmul.f32 0.044715, %v4360_v33 }
 0x247   : > { %v2762_v0 = vpop.eup %2761  ;;  %v1406_v51 = vmul.f32 %v1342_v14, %v894_v23  ;;  %v1347_v7 = vadd.f32 1.0, %v2760_v39  ;;  %2767 = vtanh.f32 %v1227_v37  ;;  %v4376_v42 = vadd.f32 %v871_v2, %v4743_v17 }
 0x248   : > { %1859 = vmatprep.mubr.f32.mxu0 %v1407_v30  ;;  %v1346_v49 = vadd.f32 1.0, %v2762_v0  ;;  %2769 = vtanh.f32 %v1226_v43  ;;  %v1167_v13 = vadd.f32 %v1103_v52, %v4210_v58  ;;  %v4380_v53 = vmul.f32 %v995_v59, %v4337_v29 }
 0x249   : > { %1860 = vmatmul.mubr.f32.gmra.mrb[6].mxu0 %v1406_v51  ;;  %v1411_v47 = vmul.f32 %v1347_v7, %v899_v18  ;;  %v907_v12 = vmul.f32 0.5, %v4179_v40  ;;  %v1102_v23 = vmul.f32 %v4260_v16, %v4207_v46  ;;  %v906_v28 = vmul.f32 0.5, %v4176_v25 }
 0x24a   : > { %v1002_v57 = vmul.f32 0.044715, %v4372_v24  ;;  %v1231_v61 = vmul.f32 0.7978846, %v1167_v13  ;;  %v1107_v2 = vmul.f32 %v4283_v22, %v4245_v21  ;;  %v1410_v41 = vmul.f32 %v1346_v49, %v898_v56 }
 0x24b   : > { %1865 = vmatprep.mubr.f32.mxu0 %v1411_v47  ;;  %v4390_v18 = vmul.f32 %v998_v20, %v4349_v5  ;;  %v4393_v45 = vmul.f32 %v999_v3, %v4360_v33  ;;  %v1166_v40 = vadd.f32 %v1102_v23, %v4207_v46  ;;  %v1003_v16 = vmul.f32 0.044715, %v4376_v42 }
 0x24c   : > { %v2764_v31 = vpop.eup %2763  ;;  %2771 = vtanh.f32 %v1231_v61  ;;  %v1171_v25 = vadd.f32 %v1107_v2, %v4245_v21  ;;  %v1106_v55 = vmul.f32 %v4270_v10, %v4221_v54  ;;  %v911_v56 = vmul.f32 0.5, %v4210_v58 }
 0x24d   : > { %1866 = vmatmul.mubr.f32.gmra.mrb[8].mxu0 %v1410_v41  ;;  %v1351_v22 = vadd.f32 1.0, %v2764_v31  ;;  %v4402_v35 = vmul.f32 0.5, %v4207_v46  ;;  %v1230_v59 = vmul.f32 0.7978846, %v1166_v40  ;;  %v4405_v14 = vmul.f32 %v1002_v57, %v4372_v24 }
 0x24e   : > { %v2766_v50 = vpop.eup %2765  ;;  %v1235_v37 = vmul.f32 0.7978846, %v1171_v25  ;;  %v1170_v52 = vadd.f32 %v1106_v55, %v4221_v54  ;;  %v1111_v39 = vmul.f32 %v4301_v36, %v4256_v26  ;;  %v1110_v58 = vmul.f32 %v4296_v62, %v4250_v27 }
 0x24f   : > { %v1415_v30 = vmul.f32 %v1351_v22, %v903_v1  ;;  %v1350_v10 = vadd.f32 1.0, %v2766_v50  ;;  %2773 = vtanh.f32 %v1230_v59  ;;  %v4413_v46 = vmul.f32 %v1003_v16, %v4376_v42 }
 0x250   : > { %2775 = vtanh.f32 %v1235_v37  ;;  %v1234_v20 = vmul.f32 0.7978846, %v1170_v52  ;;  %v1175_v43 = vadd.f32 %v1111_v39, %v4256_v26  ;;  %v4418_v7 = vadd.f32 %v4353_v19, %v4736_v34 }
 0x251   : > { %v2768_v0 = vpop.eup %2767  ;;  %1871 = vmatprep.mubr.f32.mxu0 %v1415_v30  ;;  %v1414_v51 = vmul.f32 %v1350_v10, %v902_v44  ;;  %v1174_v36 = vadd.f32 %v1110_v58, %v4250_v27  ;;  %v1115_v1 = vmul.f32 %v4328_v9, %v4291_v38  ;;  %v1114_v13 = vmul.f32 %v4320_v8, %v4280_v32 }
 0x252   : > { %v2770_v62 = vpop.eup %2769  ;;  %v1355_v3 = vadd.f32 1.0, %v2768_v0  ;;  %2777 = vtanh.f32 %v1234_v20  ;;  %v1239_v49 = vmul.f32 0.7978846, %v1175_v43  ;;  %v4427_v44 = vadd.f32 %v4363_v6, %v4743_v17 }
 0x253   : > { %1872 = vmatmul.mubr.f32.gmra.mrb[10].mxu0 %v1414_v51  ;;  %v1354_v47 = vadd.f32 1.0, %v2770_v62  ;;  %v1238_v34 = vmul.f32 0.7978846, %v1174_v36  ;;  %v1179_v19 = vadd.f32 %v1115_v1, %v4291_v38  ;;  %v1178_v9 = vadd.f32 %v1114_v13, %v4280_v32 }
 0x254   : > { %v1419_v23 = vmul.f32 %v1355_v3, %v907_v12  ;;  %2779 = vtanh.f32 %v1239_v49  ;;  %v1119_v57 = vmul.f32 %v4344_v48, %v4309_v11  ;;  %v915_v2 = vmul.f32 0.5, %v4245_v21 }
 0x255   : > { %v1418_v61 = vmul.f32 %v1354_v47, %v906_v28  ;;  %2781 = vtanh.f32 %v1238_v34  ;;  %v1243_v8 = vmul.f32 0.7978846, %v1179_v19  ;;  %v1006_v17 = vmul.f32 0.044715, %v4418_v7 }
 0x256   : > { %v2772_v41 = vpop.eup %2771  ;;  %1877 = vmatprep.mubr.f32.mxu0 %v1419_v23  ;;  %v1242_v6 = vmul.f32 0.7978846, %v1178_v9  ;;  %v1183_v40 = vadd.f32 %v1119_v57, %v4309_v11  ;;  %v1118_v12 = vmul.f32 %v4341_v15, %v4305_v63  ;;  %v1007_v16 = vmul.f32 0.044715, %v4427_v44 }
 0x257   : > { %1878 = vmatmul.mubr.f32.gmra.mrb[12].mxu0 %v1418_v61  ;;  %v1359_v31 = vadd.f32 1.0, %v2772_v41  ;;  %2783 = vtanh.f32 %v1243_v8  ;;  %v1123_v21 = vmul.f32 %v4380_v53, %v4337_v29  ;;  %v1122_v25 = vmul.f32 %v4356_v60, %v4317_v4 }
 0x258   : > { %2785 = vtanh.f32 %v1242_v6  ;;  %v1247_v48 = vmul.f32 0.7978846, %v1183_v40  ;;  %v1182_v28 = vadd.f32 %v1118_v12, %v4305_v63  ;;  %v914_v59 = vmul.f32 0.5, %v4221_v54 }
 0x259   : > { %v2774_v55 = vpop.eup %2773  ;;  %v1423_v22 = vmul.f32 %v1359_v31, %v911_v56  ;;  %v1187_v15 = vadd.f32 %v1123_v21, %v4337_v29  ;;  %v1127_v50 = vmul.f32 %v4393_v45, %v4360_v33  ;;  %v1186_v39 = vadd.f32 %v1122_v25, %v4317_v4 }
 0x25a   : > { %v2776_v37 = vpop.eup %2775  ;;  %v1358_v52 = vadd.f32 1.0, %v2774_v55  ;;  %2787 = vtanh.f32 %v1247_v48  ;;  %v1246_v53 = vmul.f32 0.7978846, %v1182_v28  ;;  %v1071_v30 = vmul.f32 %v1007_v16, %v4427_v44 }
 0x25b   : > { %1883 = vmatprep.mubr.f32.mxu0 %v1423_v22  ;;  %v1363_v10 = vadd.f32 1.0, %v2776_v37  ;;  %v1251_v60 = vmul.f32 0.7978846, %v1187_v15  ;;  %v1191_v56 = vadd.f32 %v1127_v50, %v4360_v33  ;;  %v1250_v20 = vmul.f32 0.7978846, %v1186_v39 }
 0x25c   : > { %v2778_v58 = vpop.eup %2777  ;;  %v1422_v54 = vmul.f32 %v1358_v52, %v4402_v35  ;;  %2789 = vtanh.f32 %v1246_v53  ;;  %v1126_v45 = vmul.f32 %v4390_v18, %v4349_v5  ;;  %v919_v1 = vmul.f32 0.5, %v4256_v26 }
 0x25d   : > { %v1427_v43 = vmul.f32 %v1363_v10, %v915_v2  ;;  %v1362_v0 = vadd.f32 1.0, %v2778_v58  ;;  %2791 = vtanh.f32 %v1251_v60  ;;  %v1255_v51 = vmul.f32 0.7978846, %v1191_v56 }
 0x25e   : > { %v2780_v36 = vpop.eup %2779  ;;  %1884 = vmatmul.mubr.f32.gmra.mrb[14].mxu0 %v1422_v54  ;;  %2793 = vtanh.f32 %v1250_v20  ;;  %v1190_v62 = vadd.f32 %v1126_v45, %v4349_v5  ;;  %v1131_v3 = vmul.f32 %v4413_v46, %v4376_v42  ;;  %v1070_v49 = vmul.f32 %v1006_v17, %v4418_v7 }
 0x25f   : > { %v2782_v35 = vpop.eup %2781  ;;  %1889 = vmatprep.mubr.f32.mxu0 %v1427_v43  ;;  %v1426_v13 = vmul.f32 %v1362_v0, %v914_v59  ;;  %v1367_v18 = vadd.f32 1.0, %v2780_v36  ;;  %2795 = vtanh.f32 %v1255_v51  ;;  %v1130_v26 = vmul.f32 %v4405_v14, %v4372_v24 }
 0x260   : > { %v1366_v47 = vadd.f32 1.0, %v2782_v35  ;;  %v1254_v34 = vmul.f32 0.7978846, %v1190_v62  ;;  %v1195_v19 = vadd.f32 %v1131_v3, %v4376_v42  ;;  %v918_v57 = vmul.f32 0.5, %v4250_v27 }
 0x261   : > { %v2784_v23 = vpop.eup %2783  ;;  %v1431_v9 = vmul.f32 %v1367_v18, %v919_v1  ;;  %v1135_v46 = vmul.f32 %v1071_v30, %v4427_v44  ;;  %v923_v2 = vmul.f32 0.5, %v4291_v38  ;;  %v1194_v6 = vadd.f32 %v1130_v26, %v4372_v24  ;;  %v2037_v26 = vld [vmem:[#allocation11] sm:$0x3] }
 0x262   : > { %v2786_v61 = vpop.eup %2785  ;;  %1890 = vmatmul.mubr.f32.gmra.mrb[16].mxu0 %v1426_v13  ;;  %v1371_v8 = vadd.f32 1.0, %v2784_v23  ;;  %2797 = vtanh.f32 %v1254_v34  ;;  %v1259_v41 = vmul.f32 0.7978846, %v1195_v19  ;;  %v1134_v14 = vmul.f32 %v1070_v49, %v4418_v7  ;;  %v4771_v23 = vld [vmem:[#allocation18_spill] sm:$0xff] }
 0x263   : > { %1895 = vmatprep.mubr.f32.mxu0 %v1431_v9  ;;  %v1370_v17 = vadd.f32 1.0, %v2786_v61  ;;  %v1199_v40 = vadd.f32 %v1135_v46, %v4427_v44  ;;  %v1430_v31 = vmul.f32 %v1366_v47, %v918_v57  ;;  %v922_v16 = vmul.f32 0.5, %v4280_v32 }
 0x264   : > { %v2788_v12 = vpop.eup %2787  ;;  %v1435_v27 = vmul.f32 %v1371_v8, %v923_v2  ;;  %2799 = vtanh.f32 %v1259_v41  ;;  %v927_v21 = vmul.f32 0.5, %v4309_v11  ;;  %v1258_v48 = vmul.f32 0.7978846, %v1194_v6 }
 0x265   : > { %v1375_v38 = vadd.f32 1.0, %v2788_v12  ;;  %v1263_v28 = vmul.f32 0.7978846, %v1199_v40  ;;  %v1198_v55 = vadd.f32 %v1134_v14, %v4418_v7  ;;  %v1434_v59 = vmul.f32 %v1370_v17, %v922_v16 }
 0x266   : > { %v2790_v25 = vpop.eup %2789  ;;  %1896 = vmatmul.mubr.f32.gmra.mrb[18].mxu0 %v1430_v31  ;;  %2801 = vtanh.f32 %v1258_v48  ;;  %v931_v11 = vmul.f32 0.5, %v4337_v29  ;;  %v926_v39 = vmul.f32 0.5, %v4305_v63  ;;  %v935_v54 = vmul.f32 0.5, %v4360_v33 }
 0x267   : > { %v2792_v22 = vpop.eup %2791  ;;  %1901 = vmatprep.mubr.f32.mxu0 %v1435_v27  ;;  %v1439_v15 = vmul.f32 %v1375_v38, %v927_v21  ;;  %v1374_v37 = vadd.f32 1.0, %v2790_v25  ;;  %2803 = vtanh.f32 %v1263_v28  ;;  %v1262_v32 = vmul.f32 0.7978846, %v1198_v55 }
 0x268   : > { %v2794_v50 = vpop.eup %2793  ;;  %v1379_v52 = vadd.f32 1.0, %v2792_v22  ;;  %v930_v45 = vmul.f32 0.5, %v4317_v4  ;;  %v939_v63 = vmul.f32 0.5, %v4376_v42  ;;  %v934_v62 = vmul.f32 0.5, %v4349_v5 }
 0x269   : > { %v2796_v53 = vpop.eup %2795  ;;  %2805 = vtanh.f32 %v1262_v32  ;;  %v1438_v56 = vmul.f32 %v1374_v37, %v926_v39  ;;  %v1378_v58 = vadd.f32 1.0, %v2794_v50  ;;  %v943_v4 = vmul.f32 0.5, %v4427_v44 }
 0x26a   : > { %1902 = vmatmul.mubr.f32.gmra.mrb[20].mxu0 %v1434_v59  ;;  %v1443_v30 = vmul.f32 %v1379_v52, %v931_v11  ;;  %v1383_v10 = vadd.f32 1.0, %v2796_v53  ;;  %v938_v18 = vmul.f32 0.5, %v4372_v24  ;;  %v942_v19 = vmul.f32 0.5, %v4418_v7 }
 0x26b   : > { %1907 = vmatprep.mubr.f32.mxu0 %v1439_v15  ;;  %v1442_v29 = vmul.f32 %v1378_v58, %v930_v45  ;;  %v4772_v9 = vsub.s32 0, %v4771_v23  ;;  %v4773_v44 = vsub.s32 1, %v4771_v23 }
 0x26c   : > { %v2798_v60 = vpop.eup %2797  ;;  %v1447_v43 = vmul.f32 %v1383_v10, %v935_v54 }
 0x26d   : > { %v1382_v51 = vadd.f32 1.0, %v2798_v60  ;;  %v4482_v57 = vrot.slane %v2037_v26, %v4772_v9  ;;  %v4486_v46 = vrot.slane %v2037_v26, %v4773_v44 }
 0x26e   : > { %v2800_v20 = vpop.eup %2799  ;;  %1908 = vmatmul.mubr.f32.gmra.mrb[22].mxu0 %v1438_v56 }
 0x26f   : > { %1913 = vmatprep.mubr.f32.mxu0 %v1443_v30  ;;  %v1387_v0 = vadd.f32 1.0, %v2800_v20  ;;  %v1446_v33 = vmul.f32 %v1382_v51, %v934_v62 }
 0x270   : > { %v2802_v36 = vpop.eup %2801 }
 0x271   : > { %v2804_v1 = vpop.eup %2803  ;;  %v1451_v3 = vmul.f32 %v1387_v0, %v939_v63  ;;  %v1386_v49 = vadd.f32 1.0, %v2802_v36 }
 0x272   : > { %1914 = vmatmul.mubr.f32.gmra.mrb[24].mxu0 %v1442_v29  ;;  %v1391_v35 = vadd.f32 1.0, %v2804_v1 }
 0x273   : > { %1919 = vmatprep.mubr.f32.mxu0 %v1447_v43  ;;  %v2806_v13 = vpop.eup %2805  ;;  %v1450_v34 = vmul.f32 %v1386_v49, %v938_v18 }
 0x274   : > { %v1455_v47 = vmul.f32 %v1391_v35, %v943_v4  ;;  %v1390_v42 = vadd.f32 1.0, %v2806_v13 }
 0x276   : > { %1920 = vmatmul.mubr.f32.gmra.mrb[26].mxu0 %v1446_v33  ;;  %v1454_v5 = vmul.f32 %v1390_v42, %v942_v19 }
 0x277   : > { %1925 = vmatprep.mubr.f32.mxu0 %v1451_v3 }
 0x27a   : > { %1926 = vmatmul.mubr.f32.gmra.mrb[28].mxu0 %v1450_v34 }
 0x27b   : > { %1931 = vmatprep.mubr.f32.mxu0 %v1455_v47 }
 0x27e   : > { %1932 = vmatmul.mubr.f32.gmra.mrb[30].mxu0 %v1454_v5 }
 0x30d   : > { %v1843_v24 = vpop.f32.mrb[0].mxu0 }
 0x30e   : > { %v2049_v61 = vadd.f32 %v4482_v57, %v1843_v24  ;;  %v1845_v2 = vpop.f32.mrb[1].mxu0 }
 0x30f   : > { %v2050_v8 = vadd.f32 %v4486_v46, %v1845_v2 }
 0x310   : > { %2081 = vst [vmem:[%s4492_s26] sm:$0xff] %v2049_v61 }
 0x311   : > { %2082 = vst [vmem:[%s4492_s26 + $0x8] sm:$0xff] %v2050_v8 }
 0x312   : > { %v1849_v7 = vpop.f32.mrb[2].mxu0 }
 0x313   : > { %v2051_v41 = vadd.f32 %v4482_v57, %v1849_v7  ;;  %v1851_v17 = vpop.f32.mrb[3].mxu0 }
 0x314   : > { %v2052_v6 = vadd.f32 %v4486_v46, %v1851_v17 }
 0x315   : > { %2083 = vst [vmem:[%s4492_s26 + $0x10] sm:$0xff] %v2051_v41 }
 0x316   : > { %2084 = vst [vmem:[%s4492_s26 + $0x18] sm:$0xff] %v2052_v6  ;;  %v1855_v40 = vpop.f32.mrb[4].mxu0 }
 0x317   : > { %v2053_v14 = vadd.f32 %v4482_v57, %v1855_v40  ;;  %v1857_v12 = vpop.f32.mrb[5].mxu0 }
 0x318   : > { %v2054_v31 = vadd.f32 %v4486_v46, %v1857_v12 }
 0x319   : > { %2085 = vst [vmem:[%s4492_s26 + $0x20] sm:$0xff] %v2053_v14 }
 0x31a   : > { %2086 = vst [vmem:[%s4492_s26 + $0x28] sm:$0xff] %v2054_v31 }
 0x31c   : > { %v1861_v27 = vpop.f32.mrb[6].mxu0 }
 0x31d   : > { %v2055_v16 = vadd.f32 %v4482_v57, %v1861_v27  ;;  %v1863_v21 = vpop.f32.mrb[7].mxu0 }
 0x31e   : > { %v2056_v38 = vadd.f32 %v4486_v46, %v1863_v21 }
 0x31f   : > { %2087 = vst [vmem:[%s4492_s26 + $0x30] sm:$0xff] %v2055_v16 }
 0x320   : > { %2088 = vst [vmem:[%s4492_s26 + $0x38] sm:$0xff] %v2056_v38  ;;  %v1867_v48 = vpop.f32.mrb[8].mxu0 }
 0x321   : > { %v2057_v28 = vadd.f32 %v4482_v57, %v1867_v48  ;;  %v1869_v25 = vpop.f32.mrb[9].mxu0 }
 0x322   : > { %v2058_v55 = vadd.f32 %v4486_v46, %v1869_v25 }
 0x323   : > { %2089 = vst [vmem:[%s4492_s26 + $0x40] sm:$0xff] %v2057_v28 }
 0x324   : > { %2090 = vst [vmem:[%s4492_s26 + $0x48] sm:$0xff] %v2058_v55 }
 0x326   : > { %v1873_v22 = vpop.f32.mrb[10].mxu0 }
 0x327   : > { %v2059_v59 = vadd.f32 %v4482_v57, %v1873_v22  ;;  %v1875_v15 = vpop.f32.mrb[11].mxu0 }
 0x328   : > { %v2060_v50 = vadd.f32 %v4486_v46, %v1875_v15 }
 0x329   : > { %2091 = vst [vmem:[%s4492_s26 + $0x50] sm:$0xff] %v2059_v59 }
 0x32a   : > { %2092 = vst [vmem:[%s4492_s26 + $0x58] sm:$0xff] %v2060_v50  ;;  %v1879_v37 = vpop.f32.mrb[12].mxu0 }
 0x32b   : > { %v2061_v52 = vadd.f32 %v4482_v57, %v1879_v37  ;;  %v1881_v32 = vpop.f32.mrb[13].mxu0 }
 0x32c   : > { %v2062_v53 = vadd.f32 %v4486_v46, %v1881_v32 }
 0x32d   : > { %2093 = vst [vmem:[%s4492_s26 + $0x60] sm:$0xff] %v2061_v52 }
 0x32e   : > { %2094 = vst [vmem:[%s4492_s26 + $0x68] sm:$0xff] %v2062_v53 }
 0x331   : > { %v1885_v11 = vpop.f32.mrb[14].mxu0 }
 0x332   : > { %v2063_v39 = vadd.f32 %v4482_v57, %v1885_v11  ;;  %v1887_v30 = vpop.f32.mrb[15].mxu0 }
 0x333   : > { %v2064_v10 = vadd.f32 %v4486_v46, %v1887_v30 }
 0x334   : > { %2095 = vst [vmem:[%s4492_s26 + $0x70] sm:$0xff] %v2063_v39 }
 0x335   : > { %2096 = vst [vmem:[%s4492_s26 + $0x78] sm:$0xff] %v2064_v10  ;;  %v1891_v60 = vpop.f32.mrb[16].mxu0 }
 0x336   : > { %v2065_v56 = vadd.f32 %v4482_v57, %v1891_v60  ;;  %v1893_v58 = vpop.f32.mrb[17].mxu0 }
 0x337   : > { %v2066_v54 = vadd.f32 %v4486_v46, %v1893_v58 }
 0x338   : > { %2097 = vst [vmem:[%s4492_s26 + $0x80] sm:$0xff] %v2065_v56 }
 0x339   : > { %2098 = vst [vmem:[%s4492_s26 + $0x88] sm:$0xff] %v2066_v54  ;;  %v1897_v20 = vpop.f32.mrb[18].mxu0 }
 0x33a   : > { %v2067_v45 = vadd.f32 %v4482_v57, %v1897_v20  ;;  %v1899_v43 = vpop.f32.mrb[19].mxu0 }
 0x33b   : > { %v2068_v0 = vadd.f32 %v4486_v46, %v1899_v43 }
 0x33c   : > { %2099 = vst [vmem:[%s4492_s26 + $0x90] sm:$0xff] %v2067_v45 }
 0x33d   : > { %2100 = vst [vmem:[%s4492_s26 + $0x98] sm:$0xff] %v2068_v0  ;;  %v1903_v29 = vpop.f32.mrb[20].mxu0 }
 0x33e   : > { %v2069_v51 = vadd.f32 %v4482_v57, %v1903_v29  ;;  %v1905_v36 = vpop.f32.mrb[21].mxu0 }
 0x33f   : > { %v2070_v63 = vadd.f32 %v4486_v46, %v1905_v36 }
 0x340   : > { %2101 = vst [vmem:[%s4492_s26 + $0xa0] sm:$0xff] %v2069_v51 }
 0x341   : > { %2102 = vst [vmem:[%s4492_s26 + $0xa8] sm:$0xff] %v2070_v63  ;;  %v1909_v1 = vpop.f32.mrb[22].mxu0 }
 0x342   : > { %v2071_v62 = vadd.f32 %v4482_v57, %v1909_v1  ;;  %v1911_v3 = vpop.f32.mrb[23].mxu0 }
 0x343   : > { %v2072_v35 = vadd.f32 %v4486_v46, %v1911_v3 }
 0x344   : > { %2103 = vst [vmem:[%s4492_s26 + $0xb0] sm:$0xff] %v2071_v62 }
 0x345   : > { %2104 = vst [vmem:[%s4492_s26 + $0xb8] sm:$0xff] %v2072_v35  ;;  %v1915_v33 = vpop.f32.mrb[24].mxu0 }
 0x346   : > { %v2073_v49 = vadd.f32 %v4482_v57, %v1915_v33  ;;  %v1917_v13 = vpop.f32.mrb[25].mxu0 }
 0x347   : > { %v2074_v4 = vadd.f32 %v4486_v46, %v1917_v13 }
 0x348   : > { %2105 = vst [vmem:[%s4492_s26 + $0xc0] sm:$0xff] %v2073_v49 }
 0x349   : > { %2106 = vst [vmem:[%s4492_s26 + $0xc8] sm:$0xff] %v2074_v4  ;;  %v1921_v18 = vpop.f32.mrb[26].mxu0 }
 0x34a   : > { %v2075_v47 = vadd.f32 %v4482_v57, %v1921_v18  ;;  %v1923_v34 = vpop.f32.mrb[27].mxu0 }
 0x34b   : > { %v2076_v42 = vadd.f32 %v4486_v46, %v1923_v34 }
 0x34c   : > { %2107 = vst [vmem:[%s4492_s26 + $0xd0] sm:$0xff] %v2075_v47 }
 0x34d   : > { %2108 = vst [vmem:[%s4492_s26 + $0xd8] sm:$0xff] %v2076_v42  ;;  %v1927_v19 = vpop.f32.mrb[28].mxu0 }
 0x34e   : > { %v2077_v5 = vadd.f32 %v4482_v57, %v1927_v19  ;;  %v1929_v26 = vpop.f32.mrb[29].mxu0 }
 0x34f   : > { %v2078_v23 = vadd.f32 %v4486_v46, %v1929_v26 }
 0x350   : > { %2109 = vst [vmem:[%s4492_s26 + $0xe0] sm:$0xff] %v2077_v5 }
 0x351   : > { %2110 = vst [vmem:[%s4492_s26 + $0xe8] sm:$0xff] %v2078_v23  ;;  %v1933_v9 = vpop.f32.mrb[30].mxu0 }
 0x352   : > { %v2079_v44 = vadd.f32 %v4482_v57, %v1933_v9  ;;  %v1935_v24 = vpop.f32.mrb[31].mxu0 }
 0x353   : > { %v2080_v61 = vadd.f32 %v4486_v46, %v1935_v24 }
 0x354   : > { %2111 = vst [vmem:[%s4492_s26 + $0xf0] sm:$0xff] %v2079_v44 }
 0x355   : > { %2112 = vst [vmem:[%s4492_s26 + $0xf8] sm:$0xff] %v2080_v61 }
 0x356   : > { %2962 = shalt.err (!%p2959_p0)
}
 0x357   : > { %s2963_s27 = scalar_lea.hbm %s4558_s10, 4096  ;;  %s2967_s24 = scalar_lea.hbm %s4617_s5, 8192 }
 0x358   : > { %p2964_p4 = scmp.ne.s32.totalorder %s4558_s10, %s2963_s27  ;;  %p2968_p12 = scmp.lt.u32.totalorder %s4558_s10, %s4617_s5 }
 0x359   : > { %p2969_p1 = scmp.lt.u32.totalorder %s2967_s24, %s2963_s27  ;;  %p2971_p10 = scmp.lt.u32.totalorder %s2963_s27, %s4558_s10 }
 0x35a   : > { %p2965_p13 = pnand %p2964_p4, %p3262_p5 }
 0x35b   : > { %p2970_p11 = por %p2969_p1, %p2968_p12 }
 0x35c   : > { %p2966_p6 = pneg %p2965_p13 }
 0x35d   : > { %p2972_p3 = por %p2971_p10, %p2970_p11 }
 0x35f   : > { %p2973_p2 = pnand %p2972_p3, %p2966_p6 }
 0x361   : > { %2976 = shalt.err (!%p2973_p2)
}
 0x362   : > { %s3051_s26 = smov 256   ;;  %s3052_s28 = smov 16  }
 0x363   : > { %2588 = dma.vmem_to_hbm [thread:$0]  (%p3262_p5), %s4560_s30, 4096, %s4558_s10, %s2114_s21, %s3051_s26, %s3051_s26, %s3052_s28  }
 0x364 PF: > { %s4774_s6 = sld [smem:[#allocation17_spill]]  ;;  %s2143_s29 = sand.u32 1, %s3019_s18  }
 0x365   : > { %p4776_p7 = scmp.ge.s32.totalorder %s3039_s23, 2  ;;  %s2144_s13 = scalar_lea.sflag [#allocation5], %s2143_s29 }
 0x36a   : > { %p4775_p8 = scmp.ne.s32.totalorder %s4774_s6, 0 }
 0x36c   : > { %p2608_p9 = pnand %p4776_p7, %p4775_p8 }
 0x36e   : > { %3014 = dma.done.wait (!%p2608_p9), %s2144_s13, 4096  }
 0x36f   : > { %3016 = vsyncadd (!%p2608_p9), %s2144_s13, 4294963200  ;;  %s23_s23 = sadd.s32 1, %s3039_s23   ;;  %s4777_s18 = smov %s3023_s19 }
 0x370   : > { %p20_p0 = scmp.ge.s32.totalorder %s23_s23, 4   ;;  %s4778_s19 = smov %s3027_s20 }
 0x371   : > { %s4779_s20 = smov %s3271_s25  ;;  %s4780_s21 = smov %s3035_s22 }
 0x372   : > { %s4781_s22 = smov %s4783_s16  ;;  %22 = sbr.rel (!%p20_p0) target bundleno = 10 (0xa), region = 112 }
 0x379   :  { %2149 = vsyncpa [#allocation4], 1 }
 0x37a   :  { %2151 = vsyncpa [#allocation4 + $0x1], 1 }
 0x37b   :  { %2152 = vsyncpa [#allocation7], 1 }
 0x37c   :  { %2153 = vsyncpa [#allocation10], 1 }
 0x37d   :  { %2154 = vsyncpa [#allocation5], 1 }
 0x37e   :  { %2156 = vsyncpa [#allocation5 + $0x1], 1 }

</bundles_post_ra>
